<compile_context>
chip_gen: v7x
topology: tpu7x:2x2x1
jax: 0.10.0
libtpu: 0.0.40
codegen_flags: <defaults>
</compile_context>

<pallas_src>
import functools

import jax
import jax.numpy as jnp
import numpy as np
from jax.experimental import pallas as pl
from jax.experimental.pallas import tpu as pltpu


# ----------------------------------------------------------------------------
# Config (stand-in for the PyTorch `config` dict; shapes kept small)
# ----------------------------------------------------------------------------
CONFIG = {
    "encoder": {"layers": [
        {"input": 4,  "output": 8,  "f_size": 3, "stride": 1, "padding": 1},
        {"input": 8,  "output": 16, "f_size": 3, "stride": 1, "padding": 1},
    ]},
    "decoder": {"layers": [
        {"input": 16, "output": 8,  "f_size": 3, "stride": 1, "padding": 1},
        {"input": 8,  "output": 4,  "f_size": 3, "stride": 1, "padding": 1},
    ]},
}


# ----------------------------------------------------------------------------
# Static shape planning for the fused kernel
# ----------------------------------------------------------------------------
def _plan_layers(config, H, W):
    plans = []
    h, w = H, W
    for ly in config["encoder"]["layers"]:
        k, p, s = ly["f_size"], ly["padding"], ly["stride"]
        # TODO(synk): only stride-1 "same" convs (2*p == k-1) are implemented.
        assert s == 1 and 2 * p == k - 1
        # TODO(synk): MaxPool2d ceil_mode for odd conv-output sizes not implemented.
        assert h % 2 == 0 and w % 2 == 0
        plans.append(dict(kind="enc", k=k, p=p, cin=ly["input"], cout=ly["output"],
                          h=h, w=w))
        h, w = h // 2, w // 2
    lat_chw = (config["encoder"]["layers"][-1]["output"], h, w)

    n_dec = len(config["decoder"]["layers"])
    for i, ly in enumerate(config["decoder"]["layers"]):
        k, p, s = ly["f_size"], ly["padding"], ly["stride"]
        assert s == 1 and 2 * p == k - 1  # TODO(synk): same-conv only
        h, w = 2 * h, 2 * w               # nn.Upsample(scale_factor=2), nearest
        plans.append(dict(kind="dec_last" if i == n_dec - 1 else "dec",
                          k=k, p=p, cin=ly["input"], cout=ly["output"],
                          h=h, w=w))
    out_chw = (config["decoder"]["layers"][-1]["output"], h, w)
    return plans, lat_chw, out_chw


# ----------------------------------------------------------------------------
# Host-side constant matrices / masks (tiny, passed as kernel inputs)
# ----------------------------------------------------------------------------
def _pool_select_matrix(h, w):
    """(h*w, (h//2)*(w//2)) 0/1 matrix selecting the top-left of each 2x2 block."""
    s = np.zeros((h * w, (h // 2) * (w // 2)), np.float32)
    for i in range(h // 2):
        for j in range(w // 2):
            s[(2 * i) * w + 2 * j, i * (w // 2) + j] = 1.0
    return s


def _upsample_matrix(h, w):
    """(h*w, 4*h*w) 0/1 matrix for nearest-neighbor 2x upsample (row-major flat)."""
    s = np.zeros((h * w, (2 * h) * (2 * w)), np.float32)
    for i in range(2 * h):
        for j in range(2 * w):
            s[(i // 2) * w + (j // 2), i * (2 * w) + j] = 1.0
    return s


def _col_masks(h, w, p):
    """(2p, h*w) 0/1 lane masks for the horizontal (dw) conv halo, dw=-p..-1,+1..+p."""
    if p == 0:
        return np.ones((1, h * w), np.float32)
    col = np.arange(h * w, dtype=np.int64) % w
    rows = []
    for dw in list(range(-p, 0)) + list(range(1, p + 1)):
        rows.append(((col + dw >= 0) & (col + dw <= w - 1)).astype(np.float32))
    return np.stack(rows, 0)


# ----------------------------------------------------------------------------
# Fused autoencoder kernel: one grid step == one batch element, all layers.
# ----------------------------------------------------------------------------
def _make_fused_kernel(plans, n_enc):
    n_layers = len(plans)

    def kernel(*refs):
        x_ref = refs[0]
        params = refs[1:1 + 4 * n_layers]            # (w2, b, sel, colmask) per layer
        lat_ref = refs[1 + 4 * n_layers]
        out_ref = refs[2 + 4 * n_layers]
        stage_ref = refs[3 + 4 * n_layers]           # shared flat staging buffer
        patch_ref = refs[4 + 4 * n_layers]           # shared im2col patch matrix

        x = x_ref[0]                                 # (C0, H0*W0), channel-major f32

        for li, lp in enumerate(plans):
            w_ref, b_ref, s_ref, m_ref = params[4 * li:4 * li + 4]
            k, p = lp["k"], lp["p"]
            cin, cout = lp["cin"], lp["cout"]
            h, w = lp["h"], lp["w"]
            hw, band, kkc = h * w, w + 1, k * k * cin

            if lp["kind"] != "enc":
                # nearest 2x upsample == constant 0/1 selection matmul:
                # (Cin, hw/4) @ (hw/4, hw) -> (Cin, hw); spatial stays on lanes.
                x = jnp.dot(x, s_ref[...], preferred_element_type=jnp.float32)

            # ---- stage the flat image with zero halo bands (handles the dh halo) ----
            stage_ref[0:cin, 0:band] = jnp.zeros((cin, band), jnp.float32)
            stage_ref[0:cin, band + hw:band + hw + band] = jnp.zeros(
                (cin, band), jnp.float32)
            stage_ref[0:cin, band:band + hw] = x

            # ---- im2col: each tap is a contiguous lane slice of the staged image;
            #      dw halo via a 0/1 lane mask; lane-dense sublane row-block stores.
            for kh in range(k):
                for kw in range(k):
                    dh, dw = kh - p, kw - p
                    off = band + dh * w + dw
                    v = stage_ref[0:cin, off:off + hw]
                    if dw != 0:
                        mrow = dw + p if dw < 0 else dw + p - 1
                        v = v * m_ref[mrow:mrow + 1, :]
                    t = kh * k + kw
                    patch_ref[t * cin:(t + 1) * cin, 0:hw] = v

            # ---- one MXU matmul per conv: (Cout, K*K*Cin) @ (K*K*Cin, hw) ----
            y = jnp.dot(w_ref[...], patch_ref[0:kkc, 0:hw],
                        preferred_element_type=jnp.float32) + b_ref[...]

            if lp["kind"] == "enc":
                # MaxPool2d(2,2): elementwise max of 4 shifted copies, then a constant
                # 0/1 selection matmul keeps the even (i, j) positions; ReLU after
                # (ReLU commutes with the one-hot selection).
                stage_ref[0:cout, hw:hw + band] = jnp.zeros((cout, band), jnp.float32)
                stage_ref[0:cout, 0:hw] = y
                mx = jnp.maximum(
                    jnp.maximum(y, stage_ref[0:cout, 1:1 + hw]),
                    jnp.maximum(stage_ref[0:cout, w:w + hw],
                                stage_ref[0:cout, w + 1:w + 1 + hw]))
                x = jnp.maximum(
                    jnp.dot(mx, s_ref[...], preferred_element_type=jnp.float32), 0.0)
                if li == n_enc - 1:
                    lat_ref[...] = x[None].astype(lat_ref.dtype)
            elif lp["kind"] == "dec":
                x = jnp.maximum(y, 0.0)
            else:                                    # last decoder layer
                x = jax.nn.sigmoid(y)

        out_ref[...] = x[None].astype(out_ref.dtype)  # (1, Cout, H*W): lane-dense

    return kernel


# ----------------------------------------------------------------------------
# Wrapper: NCHW in, (latent, output) NCHW out — single pallas_call.
# ----------------------------------------------------------------------------
def autoencoder_forward(x_nchw, enc_params, dec_params, config):
    N, C0, H, W = x_nchw.shape
    plans, lat_chw, out_chw = _plan_layers(config, H, W)
    n_enc = len(config["encoder"]["layers"])

    # NCHW is already channel-major: flattening H*W onto lanes is a pure reshape.
    x_flat = x_nchw.reshape(N, C0, H * W)

    flat_inputs = [x_flat]
    in_specs = [pl.BlockSpec((1, C0, H * W), lambda n: (n, 0, 0))]

    for lp, (wt, bs) in zip(plans, list(enc_params) + list(dec_params)):
        kh, kw, cin, cout = wt.shape
        # (KH, KW, Cin, Cout) -> (Cout, KH*KW*Cin); row order matches patch rows t*Cin+c.
        w2 = jnp.transpose(wt, (3, 0, 1, 2)).reshape(cout, kh * kw * cin)
        b2 = bs.reshape(cout, 1)
        if lp["kind"] == "enc":
            sel = jnp.asarray(_pool_select_matrix(lp["h"], lp["w"]))
        else:
            sel = jnp.asarray(_upsample_matrix(lp["h"] // 2, lp["w"] // 2))
        msk = jnp.asarray(_col_masks(lp["h"], lp["w"], lp["p"]))
        flat_inputs += [w2, b2, sel, msk]
        in_specs += [pl.BlockSpec(w2.shape, lambda n: (0, 0)),
                     pl.BlockSpec(b2.shape, lambda n: (0, 0)),
                     pl.BlockSpec(sel.shape, lambda n: (0, 0)),
                     pl.BlockSpec(msk.shape, lambda n: (0, 0))]

    lat_c, lat_h, lat_w = lat_chw
    out_c, out_h, out_w = out_chw
    out_shape = (jax.ShapeDtypeStruct((N, lat_c, lat_h * lat_w), x_nchw.dtype),
                 jax.ShapeDtypeStruct((N, out_c, out_h * out_w), x_nchw.dtype))
    # Latent block lane width is lat_h*lat_w (=16 here, <128); flattening it to 256
    # lanes would need an in-kernel lane-merge relayout that outweighs one tiny
    # masked store at this size, so it stays (C, H*W).
    out_specs = (pl.BlockSpec((1, lat_c, lat_h * lat_w), lambda n: (n, 0, 0)),
                 pl.BlockSpec((1, out_c, out_h * out_w), lambda n: (n, 0, 0)))

    # Two shared scratch buffers, sized to the max over layers (no per-layer buffers).
    c_max = max(max(lp["cin"], lp["cout"]) for lp in plans)
    stage_w = max(lp["h"] * lp["w"] + 2 * (lp["w"] + 1) for lp in plans)
    kkc_max = max(lp["k"] * lp["k"] * lp["cin"] for lp in plans)
    hw_max = max(lp["h"] * lp["w"] for lp in plans)
    scratch_shapes = [pltpu.VMEM((c_max, stage_w), jnp.float32),
                      pltpu.VMEM((kkc_max, hw_max), jnp.float32)]

    kernel = _make_fused_kernel(plans, n_enc)
    latent_flat, output_flat = pl.pallas_call(
        kernel,
        out_shape=out_shape,
        grid=(N,),
        in_specs=in_specs,
        out_specs=out_specs,
        scratch_shapes=scratch_shapes,
        # Batch is "parallel" so v7x's two TensorCores split it; on single-TC v5e/v6e
        # the extra grid step is ~0.35us (folding batch onto lanes is the alternative).
        compiler_params=pltpu.CompilerParams(dimension_semantics=("parallel",)),
    )(*flat_inputs)

    # Kernel already wrote channel-major (C, H*W): only reshapes here, no transposes.
    latent = latent_flat.reshape(N, lat_c, lat_h, lat_w)
    output = output_flat.reshape(N, out_c, out_h, out_w)
    return latent, output


# ----------------------------------------------------------------------------
# Parameter init (deterministic, PyTorch-like fan-in uniform). Weights stored
# as (KH, KW, Cin, Cout) == transpose of PyTorch's (Cout, Cin, KH, KW).
# ----------------------------------------------------------------------------
def init_params(config, key):
    def init_layers(layers, key):
        params = []
        for ly in layers:
            key, kw_, kb_ = jax.random.split(key, 3)
            cin, cout, k = ly["input"], ly["output"], ly["f_size"]
            bound = 1.0 / np.sqrt(cin * k * k)
            w = jax.random.uniform(kw_, (k, k, cin, cout), jnp.float32, -bound, bound)
            b = jax.random.uniform(kb_, (cout,), jnp.float32, -bound, bound)
            params.append((w, b))
        return params, key

    enc, key = init_layers(config["encoder"]["layers"], key)
    dec, _ = init_layers(config["decoder"]["layers"], key)
    return enc, dec


# ----------------------------------------------------------------------------
# Pure-JAX reference (NCHW, same ops) for a correctness sanity check
# ----------------------------------------------------------------------------
def _ref_conv(x, w, b, padding):
    w_oihw = jnp.transpose(w, (3, 2, 0, 1))
    y = jax.lax.conv_general_dilated(
        x, w_oihw, window_strides=(1, 1),
        padding=[(padding, padding), (padding, padding)],
        dimension_numbers=("NCHW", "OIHW", "NCHW"))
    return y + b[None, :, None, None]


def ref_forward(x, enc_params, dec_params, config):
    for (w, b), ly in zip(enc_params, config["encoder"]["layers"]):
        x = _ref_conv(x, w, b, ly["padding"])
        x = jax.lax.reduce_window(x, -jnp.inf, jax.lax.max,
                                  (1, 1, 2, 2), (1, 1, 2, 2), "VALID")
        x = jnp.maximum(x, 0.0)
    latent = x
    n_dec = len(dec_params)
    for i, ((w, b), ly) in enumerate(zip(dec_params, config["decoder"]["layers"])):
        x = jnp.repeat(jnp.repeat(x, 2, axis=2), 2, axis=3)
        x = _ref_conv(x, w, b, ly["padding"])
        x = jax.nn.sigmoid(x) if i == n_dec - 1 else jnp.maximum(x, 0.0)
    return latent, x


# ----------------------------------------------------------------------------
if __name__ == "__main__":
    key = jax.random.PRNGKey(0)
    key, xkey = jax.random.split(key)

    x = jax.random.normal(xkey, (2, 4, 16, 16), jnp.float32)  # NCHW like PyTorch
    enc_params, dec_params = init_params(CONFIG, key)

    fwd = jax.jit(functools.partial(autoencoder_forward, config=CONFIG))
    latent, output = fwd(x, enc_params, dec_params)
    jax.block_until_ready((latent, output))

    # sanity check against pure-JAX reference
    ref_latent, ref_output = ref_forward(x, enc_params, dec_params, CONFIG)
    assert latent.shape == (2, 16, 4, 4) and output.shape == (2, 4, 16, 16)
    # Both sides run their matmuls at default MXU precision, so tolerance sits above
    # strict f32 eps (tightened from the previous 5e-2).
    np.testing.assert_allclose(np.asarray(latent), np.asarray(ref_latent),
                               atol=2e-2, rtol=2e-2)
    np.testing.assert_allclose(np.asarray(output), np.asarray(ref_output),
                               atol=2e-2, rtol=2e-2)

    print("KERNEL_OK")
</pallas_src>

<mosaic_0001>
module attributes {stable_mosaic.version = 11 : i64} {
  func.func @kernel(%arg0: i32, %arg1: memref<1x4x256xf32, #tpu.memory_space<vmem>>, %arg2: memref<8x36xf32, #tpu.memory_space<vmem>>, %arg3: memref<8x1xf32, #tpu.memory_space<vmem>>, %arg4: memref<256x64xf32, #tpu.memory_space<vmem>>, %arg5: memref<2x256xf32, #tpu.memory_space<vmem>>, %arg6: memref<16x72xf32, #tpu.memory_space<vmem>>, %arg7: memref<16x1xf32, #tpu.memory_space<vmem>>, %arg8: memref<64x16xf32, #tpu.memory_space<vmem>>, %arg9: memref<2x64xf32, #tpu.memory_space<vmem>>, %arg10: memref<8x144xf32, #tpu.memory_space<vmem>>, %arg11: memref<8x1xf32, #tpu.memory_space<vmem>>, %arg12: memref<16x64xf32, #tpu.memory_space<vmem>>, %arg13: memref<2x64xf32, #tpu.memory_space<vmem>>, %arg14: memref<4x72xf32, #tpu.memory_space<vmem>>, %arg15: memref<4x1xf32, #tpu.memory_space<vmem>>, %arg16: memref<64x256xf32, #tpu.memory_space<vmem>>, %arg17: memref<2x256xf32, #tpu.memory_space<vmem>>, %arg18: memref<1x16x16xf32, #tpu.memory_space<vmem>>, %arg19: memref<1x4x256xf32, #tpu.memory_space<vmem>>, %arg20: memref<16x290xf32, #tpu.memory_space<vmem>>, %arg21: memref<144x256xf32, #tpu.memory_space<vmem>>) attributes {dimension_semantics = [#tpu.dimension_semantics<parallel>], iteration_bounds = array<i64: 2>, scalar_prefetch = 0 : i64, scratch_operands = 2 : i64, tpu.core_type = #tpu.core_type<tc>, window_params = [{transform_indices = @transform_0, window_bounds = array<i64: 1, 4, 256>}, {pipeline_mode = #tpu.pipeline_mode<synchronous>, transform_indices = @transform_1, window_bounds = array<i64: 8, 36>}, {pipeline_mode = #tpu.pipeline_mode<synchronous>, transform_indices = @transform_2, window_bounds = array<i64: 8, 1>}, {pipeline_mode = #tpu.pipeline_mode<synchronous>, transform_indices = @transform_3, window_bounds = array<i64: 256, 64>}, {pipeline_mode = #tpu.pipeline_mode<synchronous>, transform_indices = @transform_4, window_bounds = array<i64: 2, 256>}, {pipeline_mode = #tpu.pipeline_mode<synchronous>, transform_indices = @transform_5, window_bounds = array<i64: 16, 72>}, {pipeline_mode = #tpu.pipeline_mode<synchronous>, transform_indices = @transform_6, window_bounds = array<i64: 16, 1>}, {pipeline_mode = #tpu.pipeline_mode<synchronous>, transform_indices = @transform_7, window_bounds = array<i64: 64, 16>}, {pipeline_mode = #tpu.pipeline_mode<synchronous>, transform_indices = @transform_8, window_bounds = array<i64: 2, 64>}, {pipeline_mode = #tpu.pipeline_mode<synchronous>, transform_indices = @transform_9, window_bounds = array<i64: 8, 144>}, {pipeline_mode = #tpu.pipeline_mode<synchronous>, transform_indices = @transform_10, window_bounds = array<i64: 8, 1>}, {pipeline_mode = #tpu.pipeline_mode<synchronous>, transform_indices = @transform_11, window_bounds = array<i64: 16, 64>}, {pipeline_mode = #tpu.pipeline_mode<synchronous>, transform_indices = @transform_12, window_bounds = array<i64: 2, 64>}, {pipeline_mode = #tpu.pipeline_mode<synchronous>, transform_indices = @transform_13, window_bounds = array<i64: 4, 72>}, {pipeline_mode = #tpu.pipeline_mode<synchronous>, transform_indices = @transform_14, window_bounds = array<i64: 4, 1>}, {pipeline_mode = #tpu.pipeline_mode<synchronous>, transform_indices = @transform_15, window_bounds = array<i64: 64, 256>}, {pipeline_mode = #tpu.pipeline_mode<synchronous>, transform_indices = @transform_16, window_bounds = array<i64: 2, 256>}, {transform_indices = @transform_17, window_bounds = array<i64: 1, 16, 16>}, {transform_indices = @transform_18, window_bounds = array<i64: 1, 4, 256>}]} {
    %c0 = arith.constant 0 : index
    %c0_0 = arith.constant 0 : index
    %c0_1 = arith.constant 0 : index
    %0 = vector.load %arg1[%c0, %c0_0, %c0_1] : memref<1x4x256xf32, #tpu.memory_space<vmem>>, vector<1x4x256xf32>
    %1 = vector.shape_cast %0 : vector<1x4x256xf32> to vector<4x256xf32>
    %cst = arith.constant 0.000000e+00 : f32
    %2 = vector.broadcast %cst : f32 to vector<4x17xf32>
    %c0_2 = arith.constant 0 : index
    %c0_3 = arith.constant 0 : index
    %3 = vector.load %arg20[%c0_2, %c0_3] : memref<16x290xf32, #tpu.memory_space<vmem>>, vector<4x17xf32>
    tpu.vector_store %arg20[%c0_2, %c0_3], %2 {strides = array<i32>} : memref<16x290xf32, #tpu.memory_space<vmem>>, vector<4x17xf32>,
    %cst_4 = arith.constant 0.000000e+00 : f32
    %4 = vector.broadcast %cst_4 : f32 to vector<4x17xf32>
    %c0_5 = arith.constant 0 : index
    %c273 = arith.constant 273 : index
    %5 = vector.load %arg20[%c0_5, %c273] : memref<16x290xf32, #tpu.memory_space<vmem>>, vector<4x17xf32>
    tpu.vector_store %arg20[%c0_5, %c273], %4 {strides = array<i32>} : memref<16x290xf32, #tpu.memory_space<vmem>>, vector<4x17xf32>,
    %c0_6 = arith.constant 0 : index
    %c17 = arith.constant 17 : index
    %6 = vector.load %arg20[%c0_6, %c17] : memref<16x290xf32, #tpu.memory_space<vmem>>, vector<4x256xf32>
    tpu.vector_store %arg20[%c0_6, %c17], %1 {strides = array<i32>} : memref<16x290xf32, #tpu.memory_space<vmem>>, vector<4x256xf32>,
    %c0_7 = arith.constant 0 : index
    %c0_8 = arith.constant 0 : index
    %7 = vector.load %arg20[%c0_7, %c0_8] : memref<16x290xf32, #tpu.memory_space<vmem>>, vector<4x256xf32>
    %c0_9 = arith.constant 0 : index
    %c0_10 = arith.constant 0 : index
    %8 = vector.load %arg5[%c0_9, %c0_10] : memref<2x256xf32, #tpu.memory_space<vmem>>, vector<1x256xf32>
    %9 = vector.broadcast %8 : vector<1x256xf32> to vector<4x256xf32>
    %10 = arith.mulf %7, %9 : vector<4x256xf32>
    %c0_11 = arith.constant 0 : index
    %c0_12 = arith.constant 0 : index
    %11 = vector.load %arg21[%c0_11, %c0_12] : memref<144x256xf32, #tpu.memory_space<vmem>>, vector<4x256xf32>
    tpu.vector_store %arg21[%c0_11, %c0_12], %10 {strides = array<i32>} : memref<144x256xf32, #tpu.memory_space<vmem>>, vector<4x256xf32>,
    %c0_13 = arith.constant 0 : index
    %c1 = arith.constant 1 : index
    %12 = vector.load %arg20[%c0_13, %c1] : memref<16x290xf32, #tpu.memory_space<vmem>>, vector<4x256xf32>
    %c4 = arith.constant 4 : index
    %c0_14 = arith.constant 0 : index
    %13 = vector.load %arg21[%c4, %c0_14] : memref<144x256xf32, #tpu.memory_space<vmem>>, vector<4x256xf32>
    tpu.vector_store %arg21[%c4, %c0_14], %12 {strides = array<i32>} : memref<144x256xf32, #tpu.memory_space<vmem>>, vector<4x256xf32>,
    %c0_15 = arith.constant 0 : index
    %c2 = arith.constant 2 : index
    %14 = vector.load %arg20[%c0_15, %c2] : memref<16x290xf32, #tpu.memory_space<vmem>>, vector<4x256xf32>
    %c1_16 = arith.constant 1 : index
    %c0_17 = arith.constant 0 : index
    %15 = vector.load %arg5[%c1_16, %c0_17] : memref<2x256xf32, #tpu.memory_space<vmem>>, vector<1x256xf32>
    %16 = vector.broadcast %15 : vector<1x256xf32> to vector<4x256xf32>
    %17 = arith.mulf %14, %16 : vector<4x256xf32>
    %c8 = arith.constant 8 : index
    %c0_18 = arith.constant 0 : index
    %18 = vector.load %arg21[%c8, %c0_18] : memref<144x256xf32, #tpu.memory_space<vmem>>, vector<4x256xf32>
    tpu.vector_store %arg21[%c8, %c0_18], %17 {strides = array<i32>} : memref<144x256xf32, #tpu.memory_space<vmem>>, vector<4x256xf32>,
    %c0_19 = arith.constant 0 : index
    %c16 = arith.constant 16 : index
    %19 = vector.load %arg20[%c0_19, %c16] : memref<16x290xf32, #tpu.memory_space<vmem>>, vector<4x256xf32>
    %c0_20 = arith.constant 0 : index
    %c0_21 = arith.constant 0 : index
    %20 = vector.load %arg5[%c0_20, %c0_21] : memref<2x256xf32, #tpu.memory_space<vmem>>, vector<1x256xf32>
    %21 = vector.broadcast %20 : vector<1x256xf32> to vector<4x256xf32>
    %22 = arith.mulf %19, %21 : vector<4x256xf32>
    %c12 = arith.constant 12 : index
    %c0_22 = arith.constant 0 : index
    %23 = vector.load %arg21[%c12, %c0_22] : memref<144x256xf32, #tpu.memory_space<vmem>>, vector<4x256xf32>
    tpu.vector_store %arg21[%c12, %c0_22], %22 {strides = array<i32>} : memref<144x256xf32, #tpu.memory_space<vmem>>, vector<4x256xf32>,
    %c0_23 = arith.constant 0 : index
    %c17_24 = arith.constant 17 : index
    %24 = vector.load %arg20[%c0_23, %c17_24] : memref<16x290xf32, #tpu.memory_space<vmem>>, vector<4x256xf32>
    %c16_25 = arith.constant 16 : index
    %c0_26 = arith.constant 0 : index
    %25 = vector.load %arg21[%c16_25, %c0_26] : memref<144x256xf32, #tpu.memory_space<vmem>>, vector<4x256xf32>
    tpu.vector_store %arg21[%c16_25, %c0_26], %24 {strides = array<i32>} : memref<144x256xf32, #tpu.memory_space<vmem>>, vector<4x256xf32>,
    %c0_27 = arith.constant 0 : index
    %c18 = arith.constant 18 : index
    %26 = vector.load %arg20[%c0_27, %c18] : memref<16x290xf32, #tpu.memory_space<vmem>>, vector<4x256xf32>
    %c1_28 = arith.constant 1 : index
    %c0_29 = arith.constant 0 : index
    %27 = vector.load %arg5[%c1_28, %c0_29] : memref<2x256xf32, #tpu.memory_space<vmem>>, vector<1x256xf32>
    %28 = vector.broadcast %27 : vector<1x256xf32> to vector<4x256xf32>
    %29 = arith.mulf %26, %28 : vector<4x256xf32>
    %c20 = arith.constant 20 : index
    %c0_30 = arith.constant 0 : index
    %30 = vector.load %arg21[%c20, %c0_30] : memref<144x256xf32, #tpu.memory_space<vmem>>, vector<4x256xf32>
    tpu.vector_store %arg21[%c20, %c0_30], %29 {strides = array<i32>} : memref<144x256xf32, #tpu.memory_space<vmem>>, vector<4x256xf32>,
    %c0_31 = arith.constant 0 : index
    %c32 = arith.constant 32 : index
    %31 = vector.load %arg20[%c0_31, %c32] : memref<16x290xf32, #tpu.memory_space<vmem>>, vector<4x256xf32>
    %c0_32 = arith.constant 0 : index
    %c0_33 = arith.constant 0 : index
    %32 = vector.load %arg5[%c0_32, %c0_33] : memref<2x256xf32, #tpu.memory_space<vmem>>, vector<1x256xf32>
    %33 = vector.broadcast %32 : vector<1x256xf32> to vector<4x256xf32>
    %34 = arith.mulf %31, %33 : vector<4x256xf32>
    %c24 = arith.constant 24 : index
    %c0_34 = arith.constant 0 : index
    %35 = vector.load %arg21[%c24, %c0_34] : memref<144x256xf32, #tpu.memory_space<vmem>>, vector<4x256xf32>
    tpu.vector_store %arg21[%c24, %c0_34], %34 {strides = array<i32>} : memref<144x256xf32, #tpu.memory_space<vmem>>, vector<4x256xf32>,
    %c0_35 = arith.constant 0 : index
    %c33 = arith.constant 33 : index
    %36 = vector.load %arg20[%c0_35, %c33] : memref<16x290xf32, #tpu.memory_space<vmem>>, vector<4x256xf32>
    %c28 = arith.constant 28 : index
    %c0_36 = arith.constant 0 : index
    %37 = vector.load %arg21[%c28, %c0_36] : memref<144x256xf32, #tpu.memory_space<vmem>>, vector<4x256xf32>
    tpu.vector_store %arg21[%c28, %c0_36], %36 {strides = array<i32>} : memref<144x256xf32, #tpu.memory_space<vmem>>, vector<4x256xf32>,
    %c0_37 = arith.constant 0 : index
    %c34 = arith.constant 34 : index
    %38 = vector.load %arg20[%c0_37, %c34] : memref<16x290xf32, #tpu.memory_space<vmem>>, vector<4x256xf32>
    %c1_38 = arith.constant 1 : index
    %c0_39 = arith.constant 0 : index
    %39 = vector.load %arg5[%c1_38, %c0_39] : memref<2x256xf32, #tpu.memory_space<vmem>>, vector<1x256xf32>
    %40 = vector.broadcast %39 : vector<1x256xf32> to vector<4x256xf32>
    %41 = arith.mulf %38, %40 : vector<4x256xf32>
    %c32_40 = arith.constant 32 : index
    %c0_41 = arith.constant 0 : index
    %42 = vector.load %arg21[%c32_40, %c0_41] : memref<144x256xf32, #tpu.memory_space<vmem>>, vector<4x256xf32>
    tpu.vector_store %arg21[%c32_40, %c0_41], %41 {strides = array<i32>} : memref<144x256xf32, #tpu.memory_space<vmem>>, vector<4x256xf32>,
    %c0_42 = arith.constant 0 : index
    %c0_43 = arith.constant 0 : index
    %43 = vector.load %arg2[%c0_42, %c0_43] : memref<8x36xf32, #tpu.memory_space<vmem>>, vector<8x36xf32>
    %c0_44 = arith.constant 0 : index
    %c0_45 = arith.constant 0 : index
    %44 = vector.load %arg21[%c0_44, %c0_45] : memref<144x256xf32, #tpu.memory_space<vmem>>, vector<36x256xf32>
    %cst_46 = arith.constant dense<0.000000e+00> : vector<8x256xf32>
    %45 = tpu.matmul %43, %44, %cst_46 {dimension_numbers = #tpu.dot_dimension_numbers<[1], [0], [0], [1], [0, 0, 1, 1], [], []>} : vector<8x36xf32>, vector<36x256xf32>, vector<8x256xf32> -> vector<8x256xf32>
    %c0_47 = arith.constant 0 : index
    %c0_48 = arith.constant 0 : index
    %46 = vector.load %arg3[%c0_47, %c0_48] : memref<8x1xf32, #tpu.memory_space<vmem>>, vector<8x1xf32>
    %47 = vector.broadcast %46 : vector<8x1xf32> to vector<8x256xf32>
    %48 = arith.addf %45, %47 : vector<8x256xf32>
    %cst_49 = arith.constant 0.000000e+00 : f32
    %49 = vector.broadcast %cst_49 : f32 to vector<8x17xf32>
    %c0_50 = arith.constant 0 : index
    %c256 = arith.constant 256 : index
    %50 = vector.load %arg20[%c0_50, %c256] : memref<16x290xf32, #tpu.memory_space<vmem>>, vector<8x17xf32>
    tpu.vector_store %arg20[%c0_50, %c256], %49 {strides = array<i32>} : memref<16x290xf32, #tpu.memory_space<vmem>>, vector<8x17xf32>,
    %c0_51 = arith.constant 0 : index
    %c0_52 = arith.constant 0 : index
    %51 = vector.load %arg20[%c0_51, %c0_52] : memref<16x290xf32, #tpu.memory_space<vmem>>, vector<8x256xf32>
    tpu.vector_store %arg20[%c0_51, %c0_52], %48 {strides = array<i32>} : memref<16x290xf32, #tpu.memory_space<vmem>>, vector<8x256xf32>,
    %c0_53 = arith.constant 0 : index
    %c1_54 = arith.constant 1 : index
    %52 = vector.load %arg20[%c0_53, %c1_54] : memref<16x290xf32, #tpu.memory_space<vmem>>, vector<8x256xf32>
    %53 = arith.maximumf %48, %52 : vector<8x256xf32>
    %c0_55 = arith.constant 0 : index
    %c16_56 = arith.constant 16 : index
    %54 = vector.load %arg20[%c0_55, %c16_56] : memref<16x290xf32, #tpu.memory_space<vmem>>, vector<8x256xf32>
    %c0_57 = arith.constant 0 : index
    %c17_58 = arith.constant 17 : index
    %55 = vector.load %arg20[%c0_57, %c17_58] : memref<16x290xf32, #tpu.memory_space<vmem>>, vector<8x256xf32>
    %56 = arith.maximumf %54, %55 : vector<8x256xf32>
    %57 = arith.maximumf %53, %56 : vector<8x256xf32>
    %c0_59 = arith.constant 0 : index
    %c0_60 = arith.constant 0 : index
    %58 = vector.load %arg4[%c0_59, %c0_60] : memref<256x64xf32, #tpu.memory_space<vmem>>, vector<256x64xf32>
    %cst_61 = arith.constant dense<0.000000e+00> : vector<8x64xf32>
    %59 = tpu.matmul %57, %58, %cst_61 {dimension_numbers = #tpu.dot_dimension_numbers<[1], [0], [0], [1], [0, 0, 1, 1], [], []>} : vector<8x256xf32>, vector<256x64xf32>, vector<8x64xf32> -> vector<8x64xf32>
    %cst_62 = arith.constant 0.000000e+00 : f32
    %60 = vector.broadcast %cst_62 : f32 to vector<8x64xf32>
    %61 = arith.maximumf %59, %60 : vector<8x64xf32>
    %cst_63 = arith.constant 0.000000e+00 : f32
    %62 = vector.broadcast %cst_63 : f32 to vector<8x9xf32>
    %c0_64 = arith.constant 0 : index
    %c0_65 = arith.constant 0 : index
    %63 = vector.load %arg20[%c0_64, %c0_65] : memref<16x290xf32, #tpu.memory_space<vmem>>, vector<8x9xf32>
    tpu.vector_store %arg20[%c0_64, %c0_65], %62 {strides = array<i32>} : memref<16x290xf32, #tpu.memory_space<vmem>>, vector<8x9xf32>,
    %cst_66 = arith.constant 0.000000e+00 : f32
    %64 = vector.broadcast %cst_66 : f32 to vector<8x9xf32>
    %c0_67 = arith.constant 0 : index
    %c73 = arith.constant 73 : index
    %65 = vector.load %arg20[%c0_67, %c73] : memref<16x290xf32, #tpu.memory_space<vmem>>, vector<8x9xf32>
    tpu.vector_store %arg20[%c0_67, %c73], %64 {strides = array<i32>} : memref<16x290xf32, #tpu.memory_space<vmem>>, vector<8x9xf32>,
    %c0_68 = arith.constant 0 : index
    %c9 = arith.constant 9 : index
    %66 = vector.load %arg20[%c0_68, %c9] : memref<16x290xf32, #tpu.memory_space<vmem>>, vector<8x64xf32>
    tpu.vector_store %arg20[%c0_68, %c9], %61 {strides = array<i32>} : memref<16x290xf32, #tpu.memory_space<vmem>>, vector<8x64xf32>,
    %c0_69 = arith.constant 0 : index
    %c0_70 = arith.constant 0 : index
    %67 = vector.load %arg20[%c0_69, %c0_70] : memref<16x290xf32, #tpu.memory_space<vmem>>, vector<8x64xf32>
    %c0_71 = arith.constant 0 : index
    %c0_72 = arith.constant 0 : index
    %68 = vector.load %arg9[%c0_71, %c0_72] : memref<2x64xf32, #tpu.memory_space<vmem>>, vector<1x64xf32>
    %69 = vector.broadcast %68 : vector<1x64xf32> to vector<8x64xf32>
    %70 = arith.mulf %67, %69 : vector<8x64xf32>
    %c0_73 = arith.constant 0 : index
    %c0_74 = arith.constant 0 : index
    %71 = vector.load %arg21[%c0_73, %c0_74] : memref<144x256xf32, #tpu.memory_space<vmem>>, vector<8x64xf32>
    tpu.vector_store %arg21[%c0_73, %c0_74], %70 {strides = array<i32>} : memref<144x256xf32, #tpu.memory_space<vmem>>, vector<8x64xf32>,
    %c0_75 = arith.constant 0 : index
    %c1_76 = arith.constant 1 : index
    %72 = vector.load %arg20[%c0_75, %c1_76] : memref<16x290xf32, #tpu.memory_space<vmem>>, vector<8x64xf32>
    %c8_77 = arith.constant 8 : index
    %c0_78 = arith.constant 0 : index
    %73 = vector.load %arg21[%c8_77, %c0_78] : memref<144x256xf32, #tpu.memory_space<vmem>>, vector<8x64xf32>
    tpu.vector_store %arg21[%c8_77, %c0_78], %72 {strides = array<i32>} : memref<144x256xf32, #tpu.memory_space<vmem>>, vector<8x64xf32>,
    %c0_79 = arith.constant 0 : index
    %c2_80 = arith.constant 2 : index
    %74 = vector.load %arg20[%c0_79, %c2_80] : memref<16x290xf32, #tpu.memory_space<vmem>>, vector<8x64xf32>
    %c1_81 = arith.constant 1 : index
    %c0_82 = arith.constant 0 : index
    %75 = vector.load %arg9[%c1_81, %c0_82] : memref<2x64xf32, #tpu.memory_space<vmem>>, vector<1x64xf32>
    %76 = vector.broadcast %75 : vector<1x64xf32> to vector<8x64xf32>
    %77 = arith.mulf %74, %76 : vector<8x64xf32>
    %c16_83 = arith.constant 16 : index
    %c0_84 = arith.constant 0 : index
    %78 = vector.load %arg21[%c16_83, %c0_84] : memref<144x256xf32, #tpu.memory_space<vmem>>, vector<8x64xf32>
    tpu.vector_store %arg21[%c16_83, %c0_84], %77 {strides = array<i32>} : memref<144x256xf32, #tpu.memory_space<vmem>>, vector<8x64xf32>,
    %c0_85 = arith.constant 0 : index
    %c8_86 = arith.constant 8 : index
    %79 = vector.load %arg20[%c0_85, %c8_86] : memref<16x290xf32, #tpu.memory_space<vmem>>, vector<8x64xf32>
    %c0_87 = arith.constant 0 : index
    %c0_88 = arith.constant 0 : index
    %80 = vector.load %arg9[%c0_87, %c0_88] : memref<2x64xf32, #tpu.memory_space<vmem>>, vector<1x64xf32>
    %81 = vector.broadcast %80 : vector<1x64xf32> to vector<8x64xf32>
    %82 = arith.mulf %79, %81 : vector<8x64xf32>
    %c24_89 = arith.constant 24 : index
    %c0_90 = arith.constant 0 : index
    %83 = vector.load %arg21[%c24_89, %c0_90] : memref<144x256xf32, #tpu.memory_space<vmem>>, vector<8x64xf32>
    tpu.vector_store %arg21[%c24_89, %c0_90], %82 {strides = array<i32>} : memref<144x256xf32, #tpu.memory_space<vmem>>, vector<8x64xf32>,
    %c0_91 = arith.constant 0 : index
    %c9_92 = arith.constant 9 : index
    %84 = vector.load %arg20[%c0_91, %c9_92] : memref<16x290xf32, #tpu.memory_space<vmem>>, vector<8x64xf32>
    %c32_93 = arith.constant 32 : index
    %c0_94 = arith.constant 0 : index
    %85 = vector.load %arg21[%c32_93, %c0_94] : memref<144x256xf32, #tpu.memory_space<vmem>>, vector<8x64xf32>
    tpu.vector_store %arg21[%c32_93, %c0_94], %84 {strides = array<i32>} : memref<144x256xf32, #tpu.memory_space<vmem>>, vector<8x64xf32>,
    %c0_95 = arith.constant 0 : index
    %c10 = arith.constant 10 : index
    %86 = vector.load %arg20[%c0_95, %c10] : memref<16x290xf32, #tpu.memory_space<vmem>>, vector<8x64xf32>
    %c1_96 = arith.constant 1 : index
    %c0_97 = arith.constant 0 : index
    %87 = vector.load %arg9[%c1_96, %c0_97] : memref<2x64xf32, #tpu.memory_space<vmem>>, vector<1x64xf32>
    %88 = vector.broadcast %87 : vector<1x64xf32> to vector<8x64xf32>
    %89 = arith.mulf %86, %88 : vector<8x64xf32>
    %c40 = arith.constant 40 : index
    %c0_98 = arith.constant 0 : index
    %90 = vector.load %arg21[%c40, %c0_98] : memref<144x256xf32, #tpu.memory_space<vmem>>, vector<8x64xf32>
    tpu.vector_store %arg21[%c40, %c0_98], %89 {strides = array<i32>} : memref<144x256xf32, #tpu.memory_space<vmem>>, vector<8x64xf32>,
    %c0_99 = arith.constant 0 : index
    %c16_100 = arith.constant 16 : index
    %91 = vector.load %arg20[%c0_99, %c16_100] : memref<16x290xf32, #tpu.memory_space<vmem>>, vector<8x64xf32>
    %c0_101 = arith.constant 0 : index
    %c0_102 = arith.constant 0 : index
    %92 = vector.load %arg9[%c0_101, %c0_102] : memref<2x64xf32, #tpu.memory_space<vmem>>, vector<1x64xf32>
    %93 = vector.broadcast %92 : vector<1x64xf32> to vector<8x64xf32>
    %94 = arith.mulf %91, %93 : vector<8x64xf32>
    %c48 = arith.constant 48 : index
    %c0_103 = arith.constant 0 : index
    %95 = vector.load %arg21[%c48, %c0_103] : memref<144x256xf32, #tpu.memory_space<vmem>>, vector<8x64xf32>
    tpu.vector_store %arg21[%c48, %c0_103], %94 {strides = array<i32>} : memref<144x256xf32, #tpu.memory_space<vmem>>, vector<8x64xf32>,
    %c0_104 = arith.constant 0 : index
    %c17_105 = arith.constant 17 : index
    %96 = vector.load %arg20[%c0_104, %c17_105] : memref<16x290xf32, #tpu.memory_space<vmem>>, vector<8x64xf32>
    %c56 = arith.constant 56 : index
    %c0_106 = arith.constant 0 : index
    %97 = vector.load %arg21[%c56, %c0_106] : memref<144x256xf32, #tpu.memory_space<vmem>>, vector<8x64xf32>
    tpu.vector_store %arg21[%c56, %c0_106], %96 {strides = array<i32>} : memref<144x256xf32, #tpu.memory_space<vmem>>, vector<8x64xf32>,
    %c0_107 = arith.constant 0 : index
    %c18_108 = arith.constant 18 : index
    %98 = vector.load %arg20[%c0_107, %c18_108] : memref<16x290xf32, #tpu.memory_space<vmem>>, vector<8x64xf32>
    %c1_109 = arith.constant 1 : index
    %c0_110 = arith.constant 0 : index
    %99 = vector.load %arg9[%c1_109, %c0_110] : memref<2x64xf32, #tpu.memory_space<vmem>>, vector<1x64xf32>
    %100 = vector.broadcast %99 : vector<1x64xf32> to vector<8x64xf32>
    %101 = arith.mulf %98, %100 : vector<8x64xf32>
    %c64 = arith.constant 64 : index
    %c0_111 = arith.constant 0 : index
    %102 = vector.load %arg21[%c64, %c0_111] : memref<144x256xf32, #tpu.memory_space<vmem>>, vector<8x64xf32>
    tpu.vector_store %arg21[%c64, %c0_111], %101 {strides = array<i32>} : memref<144x256xf32, #tpu.memory_space<vmem>>, vector<8x64xf32>,
    %c0_112 = arith.constant 0 : index
    %c0_113 = arith.constant 0 : index
    %103 = vector.load %arg6[%c0_112, %c0_113] : memref<16x72xf32, #tpu.memory_space<vmem>>, vector<16x72xf32>
    %c0_114 = arith.constant 0 : index
    %c0_115 = arith.constant 0 : index
    %104 = vector.load %arg21[%c0_114, %c0_115] : memref<144x256xf32, #tpu.memory_space<vmem>>, vector<72x64xf32>
    %cst_116 = arith.constant dense<0.000000e+00> : vector<16x64xf32>
    %105 = tpu.matmul %103, %104, %cst_116 {dimension_numbers = #tpu.dot_dimension_numbers<[1], [0], [0], [1], [0, 0, 1, 1], [], []>} : vector<16x72xf32>, vector<72x64xf32>, vector<16x64xf32> -> vector<16x64xf32>
    %c0_117 = arith.constant 0 : index
    %c0_118 = arith.constant 0 : index
    %106 = vector.load %arg7[%c0_117, %c0_118] : memref<16x1xf32, #tpu.memory_space<vmem>>, vector<16x1xf32>
    %107 = vector.broadcast %106 : vector<16x1xf32> to vector<16x64xf32>
    %108 = arith.addf %105, %107 : vector<16x64xf32>
    %cst_119 = arith.constant 0.000000e+00 : f32
    %109 = vector.broadcast %cst_119 : f32 to vector<16x9xf32>
    %c0_120 = arith.constant 0 : index
    %c64_121 = arith.constant 64 : index
    %110 = vector.load %arg20[%c0_120, %c64_121] : memref<16x290xf32, #tpu.memory_space<vmem>>, vector<16x9xf32>
    tpu.vector_store %arg20[%c0_120, %c64_121], %109 {strides = array<i32>} : memref<16x290xf32, #tpu.memory_space<vmem>>, vector<16x9xf32>,
    %c0_122 = arith.constant 0 : index
    %c0_123 = arith.constant 0 : index
    %111 = vector.load %arg20[%c0_122, %c0_123] : memref<16x290xf32, #tpu.memory_space<vmem>>, vector<16x64xf32>
    tpu.vector_store %arg20[%c0_122, %c0_123], %108 {strides = array<i32>} : memref<16x290xf32, #tpu.memory_space<vmem>>, vector<16x64xf32>,
    %c0_124 = arith.constant 0 : index
    %c1_125 = arith.constant 1 : index
    %112 = vector.load %arg20[%c0_124, %c1_125] : memref<16x290xf32, #tpu.memory_space<vmem>>, vector<16x64xf32>
    %113 = arith.maximumf %108, %112 : vector<16x64xf32>
    %c0_126 = arith.constant 0 : index
    %c8_127 = arith.constant 8 : index
    %114 = vector.load %arg20[%c0_126, %c8_127] : memref<16x290xf32, #tpu.memory_space<vmem>>, vector<16x64xf32>
    %c0_128 = arith.constant 0 : index
    %c9_129 = arith.constant 9 : index
    %115 = vector.load %arg20[%c0_128, %c9_129] : memref<16x290xf32, #tpu.memory_space<vmem>>, vector<16x64xf32>
    %116 = arith.maximumf %114, %115 : vector<16x64xf32>
    %117 = arith.maximumf %113, %116 : vector<16x64xf32>
    %c0_130 = arith.constant 0 : index
    %c0_131 = arith.constant 0 : index
    %118 = vector.load %arg8[%c0_130, %c0_131] : memref<64x16xf32, #tpu.memory_space<vmem>>, vector<64x16xf32>
    %cst_132 = arith.constant dense<0.000000e+00> : vector<16x16xf32>
    %119 = tpu.matmul %117, %118, %cst_132 {dimension_numbers = #tpu.dot_dimension_numbers<[1], [0], [0], [1], [0, 0, 1, 1], [], []>} : vector<16x64xf32>, vector<64x16xf32>, vector<16x16xf32> -> vector<16x16xf32>
    %cst_133 = arith.constant 0.000000e+00 : f32
    %120 = vector.broadcast %cst_133 : f32 to vector<16x16xf32>
    %121 = arith.maximumf %119, %120 : vector<16x16xf32>
    %122 = vector.shape_cast %121 : vector<16x16xf32> to vector<1x16x16xf32>
    %c0_134 = arith.constant 0 : index
    %c0_135 = arith.constant 0 : index
    %c0_136 = arith.constant 0 : index
    %123 = vector.load %arg18[%c0_134, %c0_135, %c0_136] : memref<1x16x16xf32, #tpu.memory_space<vmem>>, vector<1x16x16xf32>
    tpu.vector_store %arg18[%c0_134, %c0_135, %c0_136], %122 {strides = array<i32>} : memref<1x16x16xf32, #tpu.memory_space<vmem>>, vector<1x16x16xf32>,
    %c0_137 = arith.constant 0 : index
    %c0_138 = arith.constant 0 : index
    %124 = vector.load %arg12[%c0_137, %c0_138] : memref<16x64xf32, #tpu.memory_space<vmem>>, vector<16x64xf32>
    %cst_139 = arith.constant dense<0.000000e+00> : vector<16x64xf32>
    %125 = tpu.matmul %121, %124, %cst_139 {dimension_numbers = #tpu.dot_dimension_numbers<[1], [0], [0], [1], [0, 0, 1, 1], [], []>} : vector<16x16xf32>, vector<16x64xf32>, vector<16x64xf32> -> vector<16x64xf32>
    %cst_140 = arith.constant 0.000000e+00 : f32
    %126 = vector.broadcast %cst_140 : f32 to vector<16x9xf32>
    %c0_141 = arith.constant 0 : index
    %c0_142 = arith.constant 0 : index
    %127 = vector.load %arg20[%c0_141, %c0_142] : memref<16x290xf32, #tpu.memory_space<vmem>>, vector<16x9xf32>
    tpu.vector_store %arg20[%c0_141, %c0_142], %126 {strides = array<i32>} : memref<16x290xf32, #tpu.memory_space<vmem>>, vector<16x9xf32>,
    %cst_143 = arith.constant 0.000000e+00 : f32
    %128 = vector.broadcast %cst_143 : f32 to vector<16x9xf32>
    %c0_144 = arith.constant 0 : index
    %c73_145 = arith.constant 73 : index
    %129 = vector.load %arg20[%c0_144, %c73_145] : memref<16x290xf32, #tpu.memory_space<vmem>>, vector<16x9xf32>
    tpu.vector_store %arg20[%c0_144, %c73_145], %128 {strides = array<i32>} : memref<16x290xf32, #tpu.memory_space<vmem>>, vector<16x9xf32>,
    %c0_146 = arith.constant 0 : index
    %c9_147 = arith.constant 9 : index
    %130 = vector.load %arg20[%c0_146, %c9_147] : memref<16x290xf32, #tpu.memory_space<vmem>>, vector<16x64xf32>
    tpu.vector_store %arg20[%c0_146, %c9_147], %125 {strides = array<i32>} : memref<16x290xf32, #tpu.memory_space<vmem>>, vector<16x64xf32>,
    %c0_148 = arith.constant 0 : index
    %c0_149 = arith.constant 0 : index
    %131 = vector.load %arg20[%c0_148, %c0_149] : memref<16x290xf32, #tpu.memory_space<vmem>>, vector<16x64xf32>
    %c0_150 = arith.constant 0 : index
    %c0_151 = arith.constant 0 : index
    %132 = vector.load %arg13[%c0_150, %c0_151] : memref<2x64xf32, #tpu.memory_space<vmem>>, vector<1x64xf32>
    %133 = vector.broadcast %132 : vector<1x64xf32> to vector<16x64xf32>
    %134 = arith.mulf %131, %133 : vector<16x64xf32>
    %c0_152 = arith.constant 0 : index
    %c0_153 = arith.constant 0 : index
    %135 = vector.load %arg21[%c0_152, %c0_153] : memref<144x256xf32, #tpu.memory_space<vmem>>, vector<16x64xf32>
    tpu.vector_store %arg21[%c0_152, %c0_153], %134 {strides = array<i32>} : memref<144x256xf32, #tpu.memory_space<vmem>>, vector<16x64xf32>,
    %c0_154 = arith.constant 0 : index
    %c1_155 = arith.constant 1 : index
    %136 = vector.load %arg20[%c0_154, %c1_155] : memref<16x290xf32, #tpu.memory_space<vmem>>, vector<16x64xf32>
    %c16_156 = arith.constant 16 : index
    %c0_157 = arith.constant 0 : index
    %137 = vector.load %arg21[%c16_156, %c0_157] : memref<144x256xf32, #tpu.memory_space<vmem>>, vector<16x64xf32>
    tpu.vector_store %arg21[%c16_156, %c0_157], %136 {strides = array<i32>} : memref<144x256xf32, #tpu.memory_space<vmem>>, vector<16x64xf32>,
    %c0_158 = arith.constant 0 : index
    %c2_159 = arith.constant 2 : index
    %138 = vector.load %arg20[%c0_158, %c2_159] : memref<16x290xf32, #tpu.memory_space<vmem>>, vector<16x64xf32>
    %c1_160 = arith.constant 1 : index
    %c0_161 = arith.constant 0 : index
    %139 = vector.load %arg13[%c1_160, %c0_161] : memref<2x64xf32, #tpu.memory_space<vmem>>, vector<1x64xf32>
    %140 = vector.broadcast %139 : vector<1x64xf32> to vector<16x64xf32>
    %141 = arith.mulf %138, %140 : vector<16x64xf32>
    %c32_162 = arith.constant 32 : index
    %c0_163 = arith.constant 0 : index
    %142 = vector.load %arg21[%c32_162, %c0_163] : memref<144x256xf32, #tpu.memory_space<vmem>>, vector<16x64xf32>
    tpu.vector_store %arg21[%c32_162, %c0_163], %141 {strides = array<i32>} : memref<144x256xf32, #tpu.memory_space<vmem>>, vector<16x64xf32>,
    %c0_164 = arith.constant 0 : index
    %c8_165 = arith.constant 8 : index
    %143 = vector.load %arg20[%c0_164, %c8_165] : memref<16x290xf32, #tpu.memory_space<vmem>>, vector<16x64xf32>
    %c0_166 = arith.constant 0 : index
    %c0_167 = arith.constant 0 : index
    %144 = vector.load %arg13[%c0_166, %c0_167] : memref<2x64xf32, #tpu.memory_space<vmem>>, vector<1x64xf32>
    %145 = vector.broadcast %144 : vector<1x64xf32> to vector<16x64xf32>
    %146 = arith.mulf %143, %145 : vector<16x64xf32>
    %c48_168 = arith.constant 48 : index
    %c0_169 = arith.constant 0 : index
    %147 = vector.load %arg21[%c48_168, %c0_169] : memref<144x256xf32, #tpu.memory_space<vmem>>, vector<16x64xf32>
    tpu.vector_store %arg21[%c48_168, %c0_169], %146 {strides = array<i32>} : memref<144x256xf32, #tpu.memory_space<vmem>>, vector<16x64xf32>,
    %c0_170 = arith.constant 0 : index
    %c9_171 = arith.constant 9 : index
    %148 = vector.load %arg20[%c0_170, %c9_171] : memref<16x290xf32, #tpu.memory_space<vmem>>, vector<16x64xf32>
    %c64_172 = arith.constant 64 : index
    %c0_173 = arith.constant 0 : index
    %149 = vector.load %arg21[%c64_172, %c0_173] : memref<144x256xf32, #tpu.memory_space<vmem>>, vector<16x64xf32>
    tpu.vector_store %arg21[%c64_172, %c0_173], %148 {strides = array<i32>} : memref<144x256xf32, #tpu.memory_space<vmem>>, vector<16x64xf32>,
    %c0_174 = arith.constant 0 : index
    %c10_175 = arith.constant 10 : index
    %150 = vector.load %arg20[%c0_174, %c10_175] : memref<16x290xf32, #tpu.memory_space<vmem>>, vector<16x64xf32>
    %c1_176 = arith.constant 1 : index
    %c0_177 = arith.constant 0 : index
    %151 = vector.load %arg13[%c1_176, %c0_177] : memref<2x64xf32, #tpu.memory_space<vmem>>, vector<1x64xf32>
    %152 = vector.broadcast %151 : vector<1x64xf32> to vector<16x64xf32>
    %153 = arith.mulf %150, %152 : vector<16x64xf32>
    %c80 = arith.constant 80 : index
    %c0_178 = arith.constant 0 : index
    %154 = vector.load %arg21[%c80, %c0_178] : memref<144x256xf32, #tpu.memory_space<vmem>>, vector<16x64xf32>
    tpu.vector_store %arg21[%c80, %c0_178], %153 {strides = array<i32>} : memref<144x256xf32, #tpu.memory_space<vmem>>, vector<16x64xf32>,
    %c0_179 = arith.constant 0 : index
    %c16_180 = arith.constant 16 : index
    %155 = vector.load %arg20[%c0_179, %c16_180] : memref<16x290xf32, #tpu.memory_space<vmem>>, vector<16x64xf32>
    %c0_181 = arith.constant 0 : index
    %c0_182 = arith.constant 0 : index
    %156 = vector.load %arg13[%c0_181, %c0_182] : memref<2x64xf32, #tpu.memory_space<vmem>>, vector<1x64xf32>
    %157 = vector.broadcast %156 : vector<1x64xf32> to vector<16x64xf32>
    %158 = arith.mulf %155, %157 : vector<16x64xf32>
    %c96 = arith.constant 96 : index
    %c0_183 = arith.constant 0 : index
    %159 = vector.load %arg21[%c96, %c0_183] : memref<144x256xf32, #tpu.memory_space<vmem>>, vector<16x64xf32>
    tpu.vector_store %arg21[%c96, %c0_183], %158 {strides = array<i32>} : memref<144x256xf32, #tpu.memory_space<vmem>>, vector<16x64xf32>,
    %c0_184 = arith.constant 0 : index
    %c17_185 = arith.constant 17 : index
    %160 = vector.load %arg20[%c0_184, %c17_185] : memref<16x290xf32, #tpu.memory_space<vmem>>, vector<16x64xf32>
    %c112 = arith.constant 112 : index
    %c0_186 = arith.constant 0 : index
    %161 = vector.load %arg21[%c112, %c0_186] : memref<144x256xf32, #tpu.memory_space<vmem>>, vector<16x64xf32>
    tpu.vector_store %arg21[%c112, %c0_186], %160 {strides = array<i32>} : memref<144x256xf32, #tpu.memory_space<vmem>>, vector<16x64xf32>,
    %c0_187 = arith.constant 0 : index
    %c18_188 = arith.constant 18 : index
    %162 = vector.load %arg20[%c0_187, %c18_188] : memref<16x290xf32, #tpu.memory_space<vmem>>, vector<16x64xf32>
    %c1_189 = arith.constant 1 : index
    %c0_190 = arith.constant 0 : index
    %163 = vector.load %arg13[%c1_189, %c0_190] : memref<2x64xf32, #tpu.memory_space<vmem>>, vector<1x64xf32>
    %164 = vector.broadcast %163 : vector<1x64xf32> to vector<16x64xf32>
    %165 = arith.mulf %162, %164 : vector<16x64xf32>
    %c128 = arith.constant 128 : index
    %c0_191 = arith.constant 0 : index
    %166 = vector.load %arg21[%c128, %c0_191] : memref<144x256xf32, #tpu.memory_space<vmem>>, vector<16x64xf32>
    tpu.vector_store %arg21[%c128, %c0_191], %165 {strides = array<i32>} : memref<144x256xf32, #tpu.memory_space<vmem>>, vector<16x64xf32>,
    %c0_192 = arith.constant 0 : index
    %c0_193 = arith.constant 0 : index
    %167 = vector.load %arg10[%c0_192, %c0_193] : memref<8x144xf32, #tpu.memory_space<vmem>>, vector<8x144xf32>
    %c0_194 = arith.constant 0 : index
    %c0_195 = arith.constant 0 : index
    %168 = vector.load %arg21[%c0_194, %c0_195] : memref<144x256xf32, #tpu.memory_space<vmem>>, vector<144x64xf32>
    %cst_196 = arith.constant dense<0.000000e+00> : vector<8x64xf32>
    %169 = tpu.matmul %167, %168, %cst_196 {dimension_numbers = #tpu.dot_dimension_numbers<[1], [0], [0], [1], [0, 0, 1, 1], [], []>} : vector<8x144xf32>, vector<144x64xf32>, vector<8x64xf32> -> vector<8x64xf32>
    %c0_197 = arith.constant 0 : index
    %c0_198 = arith.constant 0 : index
    %170 = vector.load %arg11[%c0_197, %c0_198] : memref<8x1xf32, #tpu.memory_space<vmem>>, vector<8x1xf32>
    %171 = vector.broadcast %170 : vector<8x1xf32> to vector<8x64xf32>
    %172 = arith.addf %169, %171 : vector<8x64xf32>
    %cst_199 = arith.constant 0.000000e+00 : f32
    %173 = vector.broadcast %cst_199 : f32 to vector<8x64xf32>
    %174 = arith.maximumf %172, %173 : vector<8x64xf32>
    %c0_200 = arith.constant 0 : index
    %c0_201 = arith.constant 0 : index
    %175 = vector.load %arg16[%c0_200, %c0_201] : memref<64x256xf32, #tpu.memory_space<vmem>>, vector<64x256xf32>
    %cst_202 = arith.constant dense<0.000000e+00> : vector<8x256xf32>
    %176 = tpu.matmul %174, %175, %cst_202 {dimension_numbers = #tpu.dot_dimension_numbers<[1], [0], [0], [1], [0, 0, 1, 1], [], []>} : vector<8x64xf32>, vector<64x256xf32>, vector<8x256xf32> -> vector<8x256xf32>
    %cst_203 = arith.constant 0.000000e+00 : f32
    %177 = vector.broadcast %cst_203 : f32 to vector<8x17xf32>
    %c0_204 = arith.constant 0 : index
    %c0_205 = arith.constant 0 : index
    %178 = vector.load %arg20[%c0_204, %c0_205] : memref<16x290xf32, #tpu.memory_space<vmem>>, vector<8x17xf32>
    tpu.vector_store %arg20[%c0_204, %c0_205], %177 {strides = array<i32>} : memref<16x290xf32, #tpu.memory_space<vmem>>, vector<8x17xf32>,
    %cst_206 = arith.constant 0.000000e+00 : f32
    %179 = vector.broadcast %cst_206 : f32 to vector<8x17xf32>
    %c0_207 = arith.constant 0 : index
    %c273_208 = arith.constant 273 : index
    %180 = vector.load %arg20[%c0_207, %c273_208] : memref<16x290xf32, #tpu.memory_space<vmem>>, vector<8x17xf32>
    tpu.vector_store %arg20[%c0_207, %c273_208], %179 {strides = array<i32>} : memref<16x290xf32, #tpu.memory_space<vmem>>, vector<8x17xf32>,
    %c0_209 = arith.constant 0 : index
    %c17_210 = arith.constant 17 : index
    %181 = vector.load %arg20[%c0_209, %c17_210] : memref<16x290xf32, #tpu.memory_space<vmem>>, vector<8x256xf32>
    tpu.vector_store %arg20[%c0_209, %c17_210], %176 {strides = array<i32>} : memref<16x290xf32, #tpu.memory_space<vmem>>, vector<8x256xf32>,
    %c0_211 = arith.constant 0 : index
    %c0_212 = arith.constant 0 : index
    %182 = vector.load %arg20[%c0_211, %c0_212] : memref<16x290xf32, #tpu.memory_space<vmem>>, vector<8x256xf32>
    %c0_213 = arith.constant 0 : index
    %c0_214 = arith.constant 0 : index
    %183 = vector.load %arg17[%c0_213, %c0_214] : memref<2x256xf32, #tpu.memory_space<vmem>>, vector<1x256xf32>
    %184 = vector.broadcast %183 : vector<1x256xf32> to vector<8x256xf32>
    %185 = arith.mulf %182, %184 : vector<8x256xf32>
    %c0_215 = arith.constant 0 : index
    %c0_216 = arith.constant 0 : index
    %186 = vector.load %arg21[%c0_215, %c0_216] : memref<144x256xf32, #tpu.memory_space<vmem>>, vector<8x256xf32>
    tpu.vector_store %arg21[%c0_215, %c0_216], %185 {strides = array<i32>} : memref<144x256xf32, #tpu.memory_space<vmem>>, vector<8x256xf32>,
    %c0_217 = arith.constant 0 : index
    %c1_218 = arith.constant 1 : index
    %187 = vector.load %arg20[%c0_217, %c1_218] : memref<16x290xf32, #tpu.memory_space<vmem>>, vector<8x256xf32>
    %c8_219 = arith.constant 8 : index
    %c0_220 = arith.constant 0 : index
    %188 = vector.load %arg21[%c8_219, %c0_220] : memref<144x256xf32, #tpu.memory_space<vmem>>, vector<8x256xf32>
    tpu.vector_store %arg21[%c8_219, %c0_220], %187 {strides = array<i32>} : memref<144x256xf32, #tpu.memory_space<vmem>>, vector<8x256xf32>,
    %c0_221 = arith.constant 0 : index
    %c2_222 = arith.constant 2 : index
    %189 = vector.load %arg20[%c0_221, %c2_222] : memref<16x290xf32, #tpu.memory_space<vmem>>, vector<8x256xf32>
    %c1_223 = arith.constant 1 : index
    %c0_224 = arith.constant 0 : index
    %190 = vector.load %arg17[%c1_223, %c0_224] : memref<2x256xf32, #tpu.memory_space<vmem>>, vector<1x256xf32>
    %191 = vector.broadcast %190 : vector<1x256xf32> to vector<8x256xf32>
    %192 = arith.mulf %189, %191 : vector<8x256xf32>
    %c16_225 = arith.constant 16 : index
    %c0_226 = arith.constant 0 : index
    %193 = vector.load %arg21[%c16_225, %c0_226] : memref<144x256xf32, #tpu.memory_space<vmem>>, vector<8x256xf32>
    tpu.vector_store %arg21[%c16_225, %c0_226], %192 {strides = array<i32>} : memref<144x256xf32, #tpu.memory_space<vmem>>, vector<8x256xf32>,
    %c0_227 = arith.constant 0 : index
    %c16_228 = arith.constant 16 : index
    %194 = vector.load %arg20[%c0_227, %c16_228] : memref<16x290xf32, #tpu.memory_space<vmem>>, vector<8x256xf32>
    %c0_229 = arith.constant 0 : index
    %c0_230 = arith.constant 0 : index
    %195 = vector.load %arg17[%c0_229, %c0_230] : memref<2x256xf32, #tpu.memory_space<vmem>>, vector<1x256xf32>
    %196 = vector.broadcast %195 : vector<1x256xf32> to vector<8x256xf32>
    %197 = arith.mulf %194, %196 : vector<8x256xf32>
    %c24_231 = arith.constant 24 : index
    %c0_232 = arith.constant 0 : index
    %198 = vector.load %arg21[%c24_231, %c0_232] : memref<144x256xf32, #tpu.memory_space<vmem>>, vector<8x256xf32>
    tpu.vector_store %arg21[%c24_231, %c0_232], %197 {strides = array<i32>} : memref<144x256xf32, #tpu.memory_space<vmem>>, vector<8x256xf32>,
    %c0_233 = arith.constant 0 : index
    %c17_234 = arith.constant 17 : index
    %199 = vector.load %arg20[%c0_233, %c17_234] : memref<16x290xf32, #tpu.memory_space<vmem>>, vector<8x256xf32>
    %c32_235 = arith.constant 32 : index
    %c0_236 = arith.constant 0 : index
    %200 = vector.load %arg21[%c32_235, %c0_236] : memref<144x256xf32, #tpu.memory_space<vmem>>, vector<8x256xf32>
    tpu.vector_store %arg21[%c32_235, %c0_236], %199 {strides = array<i32>} : memref<144x256xf32, #tpu.memory_space<vmem>>, vector<8x256xf32>,
    %c0_237 = arith.constant 0 : index
    %c18_238 = arith.constant 18 : index
    %201 = vector.load %arg20[%c0_237, %c18_238] : memref<16x290xf32, #tpu.memory_space<vmem>>, vector<8x256xf32>
    %c1_239 = arith.constant 1 : index
    %c0_240 = arith.constant 0 : index
    %202 = vector.load %arg17[%c1_239, %c0_240] : memref<2x256xf32, #tpu.memory_space<vmem>>, vector<1x256xf32>
    %203 = vector.broadcast %202 : vector<1x256xf32> to vector<8x256xf32>
    %204 = arith.mulf %201, %203 : vector<8x256xf32>
    %c40_241 = arith.constant 40 : index
    %c0_242 = arith.constant 0 : index
    %205 = vector.load %arg21[%c40_241, %c0_242] : memref<144x256xf32, #tpu.memory_space<vmem>>, vector<8x256xf32>
    tpu.vector_store %arg21[%c40_241, %c0_242], %204 {strides = array<i32>} : memref<144x256xf32, #tpu.memory_space<vmem>>, vector<8x256xf32>,
    %c0_243 = arith.constant 0 : index
    %c32_244 = arith.constant 32 : index
    %206 = vector.load %arg20[%c0_243, %c32_244] : memref<16x290xf32, #tpu.memory_space<vmem>>, vector<8x256xf32>
    %c0_245 = arith.constant 0 : index
    %c0_246 = arith.constant 0 : index
    %207 = vector.load %arg17[%c0_245, %c0_246] : memref<2x256xf32, #tpu.memory_space<vmem>>, vector<1x256xf32>
    %208 = vector.broadcast %207 : vector<1x256xf32> to vector<8x256xf32>
    %209 = arith.mulf %206, %208 : vector<8x256xf32>
    %c48_247 = arith.constant 48 : index
    %c0_248 = arith.constant 0 : index
    %210 = vector.load %arg21[%c48_247, %c0_248] : memref<144x256xf32, #tpu.memory_space<vmem>>, vector<8x256xf32>
    tpu.vector_store %arg21[%c48_247, %c0_248], %209 {strides = array<i32>} : memref<144x256xf32, #tpu.memory_space<vmem>>, vector<8x256xf32>,
    %c0_249 = arith.constant 0 : index
    %c33_250 = arith.constant 33 : index
    %211 = vector.load %arg20[%c0_249, %c33_250] : memref<16x290xf32, #tpu.memory_space<vmem>>, vector<8x256xf32>
    %c56_251 = arith.constant 56 : index
    %c0_252 = arith.constant 0 : index
    %212 = vector.load %arg21[%c56_251, %c0_252] : memref<144x256xf32, #tpu.memory_space<vmem>>, vector<8x256xf32>
    tpu.vector_store %arg21[%c56_251, %c0_252], %211 {strides = array<i32>} : memref<144x256xf32, #tpu.memory_space<vmem>>, vector<8x256xf32>,
    %c0_253 = arith.constant 0 : index
    %c34_254 = arith.constant 34 : index
    %213 = vector.load %arg20[%c0_253, %c34_254] : memref<16x290xf32, #tpu.memory_space<vmem>>, vector<8x256xf32>
    %c1_255 = arith.constant 1 : index
    %c0_256 = arith.constant 0 : index
    %214 = vector.load %arg17[%c1_255, %c0_256] : memref<2x256xf32, #tpu.memory_space<vmem>>, vector<1x256xf32>
    %215 = vector.broadcast %214 : vector<1x256xf32> to vector<8x256xf32>
    %216 = arith.mulf %213, %215 : vector<8x256xf32>
    %c64_257 = arith.constant 64 : index
    %c0_258 = arith.constant 0 : index
    %217 = vector.load %arg21[%c64_257, %c0_258] : memref<144x256xf32, #tpu.memory_space<vmem>>, vector<8x256xf32>
    tpu.vector_store %arg21[%c64_257, %c0_258], %216 {strides = array<i32>} : memref<144x256xf32, #tpu.memory_space<vmem>>, vector<8x256xf32>,
    %c0_259 = arith.constant 0 : index
    %c0_260 = arith.constant 0 : index
    %218 = vector.load %arg14[%c0_259, %c0_260] : memref<4x72xf32, #tpu.memory_space<vmem>>, vector<4x72xf32>
    %c0_261 = arith.constant 0 : index
    %c0_262 = arith.constant 0 : index
    %219 = vector.load %arg21[%c0_261, %c0_262] : memref<144x256xf32, #tpu.memory_space<vmem>>, vector<72x256xf32>
    %cst_263 = arith.constant dense<0.000000e+00> : vector<4x256xf32>
    %220 = tpu.matmul %218, %219, %cst_263 {dimension_numbers = #tpu.dot_dimension_numbers<[1], [0], [0], [1], [0, 0, 1, 1], [], []>} : vector<4x72xf32>, vector<72x256xf32>, vector<4x256xf32> -> vector<4x256xf32>
    %c0_264 = arith.constant 0 : index
    %c0_265 = arith.constant 0 : index
    %221 = vector.load %arg15[%c0_264, %c0_265] : memref<4x1xf32, #tpu.memory_space<vmem>>, vector<4x1xf32>
    %222 = vector.broadcast %221 : vector<4x1xf32> to vector<4x256xf32>
    %223 = arith.addf %220, %222 : vector<4x256xf32>
    %224 = arith.negf %223 : vector<4x256xf32>
    %225 = math.exp %224 : vector<4x256xf32>
    %cst_266 = arith.constant 1.000000e+00 : f32
    %226 = vector.broadcast %cst_266 : f32 to vector<4x256xf32>
    %227 = arith.addf %226, %225 : vector<4x256xf32>
    %228 = arith.divf %226, %227 : vector<4x256xf32>
    %229 = vector.shape_cast %228 : vector<4x256xf32> to vector<1x4x256xf32>
    %c0_267 = arith.constant 0 : index
    %c0_268 = arith.constant 0 : index
    %c0_269 = arith.constant 0 : index
    %230 = vector.load %arg19[%c0_267, %c0_268, %c0_269] : memref<1x4x256xf32, #tpu.memory_space<vmem>>, vector<1x4x256xf32>
    tpu.vector_store %arg19[%c0_267, %c0_268, %c0_269], %229 {strides = array<i32>} : memref<1x4x256xf32, #tpu.memory_space<vmem>>, vector<1x4x256xf32>,
    return
  }
  func.func @transform_0(%arg0: i32) -> (i32, i32, i32) {
    %c0_i32 = arith.constant 0 : i32
    %c0_i32_0 = arith.constant 0 : i32
    %c0_i32_1 = arith.constant 0 : i32
    return %arg0, %c0_i32, %c0_i32_0 : i32, i32, i32
  }
  func.func @transform_1(%arg0: i32) -> (i32, i32) {
    %c0_i32 = arith.constant 0 : i32
    %c0_i32_0 = arith.constant 0 : i32
    %c0_i32_1 = arith.constant 0 : i32
    return %c0_i32, %c0_i32_0 : i32, i32
  }
  func.func @transform_2(%arg0: i32) -> (i32, i32) {
    %c0_i32 = arith.constant 0 : i32
    %c0_i32_0 = arith.constant 0 : i32
    %c0_i32_1 = arith.constant 0 : i32
    return %c0_i32, %c0_i32_0 : i32, i32
  }
  func.func @transform_3(%arg0: i32) -> (i32, i32) {
    %c0_i32 = arith.constant 0 : i32
    %c0_i32_0 = arith.constant 0 : i32
    %c0_i32_1 = arith.constant 0 : i32
    return %c0_i32, %c0_i32_0 : i32, i32
  }
  func.func @transform_4(%arg0: i32) -> (i32, i32) {
    %c0_i32 = arith.constant 0 : i32
    %c0_i32_0 = arith.constant 0 : i32
    %c0_i32_1 = arith.constant 0 : i32
    return %c0_i32, %c0_i32_0 : i32, i32
  }
  func.func @transform_5(%arg0: i32) -> (i32, i32) {
    %c0_i32 = arith.constant 0 : i32
    %c0_i32_0 = arith.constant 0 : i32
    %c0_i32_1 = arith.constant 0 : i32
    return %c0_i32, %c0_i32_0 : i32, i32
  }
  func.func @transform_6(%arg0: i32) -> (i32, i32) {
    %c0_i32 = arith.constant 0 : i32
    %c0_i32_0 = arith.constant 0 : i32
    %c0_i32_1 = arith.constant 0 : i32
    return %c0_i32, %c0_i32_0 : i32, i32
  }
  func.func @transform_7(%arg0: i32) -> (i32, i32) {
    %c0_i32 = arith.constant 0 : i32
    %c0_i32_0 = arith.constant 0 : i32
    %c0_i32_1 = arith.constant 0 : i32
    return %c0_i32, %c0_i32_0 : i32, i32
  }
  func.func @transform_8(%arg0: i32) -> (i32, i32) {
    %c0_i32 = arith.constant 0 : i32
    %c0_i32_0 = arith.constant 0 : i32
    %c0_i32_1 = arith.constant 0 : i32
    return %c0_i32, %c0_i32_0 : i32, i32
  }
  func.func @transform_9(%arg0: i32) -> (i32, i32) {
    %c0_i32 = arith.constant 0 : i32
    %c0_i32_0 = arith.constant 0 : i32
    %c0_i32_1 = arith.constant 0 : i32
    return %c0_i32, %c0_i32_0 : i32, i32
  }
  func.func @transform_10(%arg0: i32) -> (i32, i32) {
    %c0_i32 = arith.constant 0 : i32
    %c0_i32_0 = arith.constant 0 : i32
    %c0_i32_1 = arith.constant 0 : i32
    return %c0_i32, %c0_i32_0 : i32, i32
  }
  func.func @transform_11(%arg0: i32) -> (i32, i32) {
    %c0_i32 = arith.constant 0 : i32
    %c0_i32_0 = arith.constant 0 : i32
    %c0_i32_1 = arith.constant 0 : i32
    return %c0_i32, %c0_i32_0 : i32, i32
  }
  func.func @transform_12(%arg0: i32) -> (i32, i32) {
    %c0_i32 = arith.constant 0 : i32
    %c0_i32_0 = arith.constant 0 : i32
    %c0_i32_1 = arith.constant 0 : i32
    return %c0_i32, %c0_i32_0 : i32, i32
  }
  func.func @transform_13(%arg0: i32) -> (i32, i32) {
    %c0_i32 = arith.constant 0 : i32
    %c0_i32_0 = arith.constant 0 : i32
    %c0_i32_1 = arith.constant 0 : i32
    return %c0_i32, %c0_i32_0 : i32, i32
  }
  func.func @transform_14(%arg0: i32) -> (i32, i32) {
    %c0_i32 = arith.constant 0 : i32
    %c0_i32_0 = arith.constant 0 : i32
    %c0_i32_1 = arith.constant 0 : i32
    return %c0_i32, %c0_i32_0 : i32, i32
  }
  func.func @transform_15(%arg0: i32) -> (i32, i32) {
    %c0_i32 = arith.constant 0 : i32
    %c0_i32_0 = arith.constant 0 : i32
    %c0_i32_1 = arith.constant 0 : i32
    return %c0_i32, %c0_i32_0 : i32, i32
  }
  func.func @transform_16(%arg0: i32) -> (i32, i32) {
    %c0_i32 = arith.constant 0 : i32
    %c0_i32_0 = arith.constant 0 : i32
    %c0_i32_1 = arith.constant 0 : i32
    return %c0_i32, %c0_i32_0 : i32, i32
  }
  func.func @transform_17(%arg0: i32) -> (i32, i32, i32) {
    %c0_i32 = arith.constant 0 : i32
    %c0_i32_0 = arith.constant 0 : i32
    %c0_i32_1 = arith.constant 0 : i32
    return %arg0, %c0_i32, %c0_i32_0 : i32, i32, i32
  }
  func.func @transform_18(%arg0: i32) -> (i32, i32, i32) {
    %c0_i32 = arith.constant 0 : i32
    %c0_i32_0 = arith.constant 0 : i32
    %c0_i32_1 = arith.constant 0 : i32
    return %arg0, %c0_i32, %c0_i32_0 : i32, i32, i32
  }
}

</mosaic_0001>

<bundles_post_ra>
// kernel: autoencoder_forward.1
= control target key start
LH: loop header
LB: loop body
LE: loop exit
PB: predicated region body
PF: predicated region fallthrough
CT: control target
= control target key end

     0   :  { %s2894_s27 = smov 0   ;;  %s3481_s0 = inlined_call_operand.vmem [shape: f32[2,4,256], index: 0, kind: input, shape index: {}]   ;;  %s3482_s1 = inlined_call_operand.vmem [shape: f32[8,36], index: 1, kind: input, shape index: {}]   ;;  %s3483_s2 = inlined_call_operand.vmem [shape: f32[8,1], index: 2, kind: input, shape index: {}]   ;;  %s3484_s3 = inlined_call_operand.vmem [shape: f32[256,64], index: 3, kind: input, shape index: {}]   ;;  %s3485_s4 = inlined_call_operand.vmem [shape: f32[2,256], index: 4, kind: input, shape index: {}, may-alias: {4,16}]   ;;  %s3486_s5 = inlined_call_operand.vmem [shape: f32[16,72], index: 5, kind: input, shape index: {}]   ;;  %s3487_s6 = inlined_call_operand.vmem [shape: f32[16,1], index: 6, kind: input, shape index: {}]   ;;  %s3488_s7 = inlined_call_operand.vmem [shape: f32[64,16], index: 7, kind: input, shape index: {}]   ;;  %s3489_s8 = inlined_call_operand.vmem [shape: f32[2,64], index: 8, kind: input, shape index: {}, may-alias: {8,12}]   ;;  %s3490_s9 = inlined_call_operand.vmem [shape: f32[8,144], index: 9, kind: input, shape index: {}]   ;;  %s3491_s10 = inlined_call_operand.vmem [shape: f32[8,1], index: 10, kind: input, shape index: {}]   ;;  %s3492_s11 = inlined_call_operand.vmem [shape: f32[16,64], index: 11, kind: input, shape index: {}]   ;;  %s3493_s12 = inlined_call_operand.vmem [shape: f32[2,64], index: 12, kind: input, shape index: {}, may-alias: {8,12}]   ;;  %s3494_s13 = inlined_call_operand.vmem [shape: f32[4,72], index: 13, kind: input, shape index: {}]   ;;  %s3495_s14 = inlined_call_operand.vmem [shape: f32[4,1], index: 14, kind: input, shape index: {}]   ;;  %s3496_s15 = inlined_call_operand.vmem [shape: f32[64,256], index: 15, kind: input, shape index: {}]   ;;  %s3497_s16 = inlined_call_operand.vmem [shape: f32[2,256], index: 16, kind: input, shape index: {}, may-alias: {4,16}]   ;;  %s3498_s17 = inlined_call_operand.vmem [shape: f32[2,16,16], index: 17, kind: output, shape index: {0}]   ;;  %s3499_s18 = inlined_call_operand.vmem [shape: f32[2,4,256], index: 18, kind: output, shape index: {1}]  }
   0x1   :  { %3543 = sst [smem:[#allocation4_spill]] %s3481_s0 }
   0x2   :  { %3544 = sst [smem:[#allocation5_spill]] %s3482_s1 }
   0x3   :  { %3545 = sst [smem:[#allocation6_spill]] %s3483_s2 }
   0x4   :  { %3546 = sst [smem:[#allocation7_spill]] %s3484_s3 }
   0x5   :  { %3547 = sst [smem:[#allocation8_spill]] %s3485_s4 }
   0x6   :  { %3548 = sst [smem:[#allocation9_spill]] %s3486_s5 }
   0x7   :  { %3549 = sst [smem:[#allocation10_spill]] %s3487_s6 }
   0x8   :  { %3550 = sst [smem:[#allocation11_spill]] %s3488_s7 }
   0x9 LB: > { %s2426_s28 = sadd.s32 4294967295, %s2774_s27   ;;  %p2430_p0 = scmp.ge.s32.totalorder %s2774_s27, 1  ;;  %s2774_s27 = sphi %s2894_s27, %s29_s27  }
   0xa   : > { %p515_p1 = scmp.lt.s32.totalorder %s2774_s27, 3 }
   0xc   : > { %p516_p2 = pnand %p2430_p0, %p515_p1 }
   0xd   : > { %p574_p3 = scmp.lt.s32.totalorder (!%p516_p2), %s2426_s28, 1  ;;  %v613_v0 = vlaneseq (!%p516_p2)  ;;  %vm590_vm0 = vcmask (!%p516_p2), 134144   ;;  %v2776_v2 = vmov (!%p516_p2), 0.0   ;;  %s3551_s4 = sld [smem:[#allocation8_spill]] (!%p516_p2)  ;;  %vm592_vm1 = vcmask (!%p516_p2), 273544  }
   0xe   : > { %519 = sbr.rel (%p516_p2) target bundleno = 3391 (0xd3f), region = 88  ;;  %591 = vst.msk [vmem:[#allocation2] sm:$0xf] (!%p516_p2), %vm590_vm0, %v2776_v2  ;;  %994 = vmatprep.mubr.f32.mxu0 (!%p516_p2), %v2776_v2  ;;  %s3552_s20 = sld [smem:[#allocation4_spill]] (!%p516_p2)  ;;  %vm605_vm2 = vcmask (!%p516_p2), 1043592   ;;  %vm600_vm3 = vcmask (!%p516_p2), 138240  }
   0xf   : > { %v614_v1 = vshrl.u32 (!%p516_p2), %v613_v0, 7  ;;  %593 = vst.msk [vmem:[#allocation2 + $0x10] sm:$0xf] (!%p516_p2), %vm592_vm1, %v2776_v2  ;;  %s3507_s22 = smov (!%p516_p2), 17   ;;  %s3519_s2 = smov (!%p516_p2), 16   ;;  %vm815_vm4 = vcmask (!%p516_p2), 261120  }
  0x10   : > { %s3526_s29 = smov (!%p516_p2), 2   ;;  %s3521_s1 = smov (!%p516_p2), 18   ;;  %vm667_vm5 = vcmask (!%p516_p2), 15360   ;;  %vm708_vm6 = vcmask (!%p516_p2), 130048   ;;  %vm771_vm7 = vcmask (!%p516_p2), 146432   ;;  %vm878_vm8 = vcmask (!%p516_p2), 277504  }
  0x11   : > { %v2911_v4 = vsub.s32 (!%p516_p2), 0, %v614_v1  ;;  %v2913_v5 = vsub.s32 (!%p516_p2), 1, %v614_v1  ;;  %s3505_s23 = smov (!%p516_p2), 32   ;;  %s3501_s24 = smov (!%p516_p2), 34   ;;  %vm747_vm9 = vcmask (!%p516_p2), 908288   ;;  %vm3524_vm10 = vcmask (!%p516_p2), 785408  }
  0x12   : > { %s3515_s30 = smov (!%p516_p2), 111   ;;  %s3541_s19 = smov (!%p516_p2), 127   ;;  %vm642_vm11 = vcmask (!%p516_p2), 1039360   ;;  %vm854_vm12 = vcmask (!%p516_p2), 777216   ;;  %vm684_vm13 = vcmask (!%p516_p2), 1031168   ;;  %vm3538_vm14 = vcmask (!%p516_p2), 916480  }
  0x13   : > { %v694_v3 = vld [vmem:[%s3551_s4] ss:$2 sm:$0x3] (!%p516_p2)  ;;  %v2437_v10 = vld [vmem:[%s3551_s4 + $0x1] ss:$2 sm:$0x3] (!%p516_p2) }
  0x14   : > { %v699_v7 = vrot.slane (!%p516_p2), %v694_v3, %v2911_v4  ;;  %v703_v9 = vrot.slane (!%p516_p2), %v694_v3, %v2913_v5  ;;  %v658_v11 = vrot.slane (!%p516_p2), %v2437_v10, %v2911_v4  ;;  %v662_v12 = vrot.slane (!%p516_p2), %v2437_v10, %v2913_v5  ;;  %v2438_v13 = vld [vmem:[%s3551_s4 + $0x1] ss:$2 sm:$0x3] (!%p516_p2)  ;;  %v801_v16 = vld [vmem:[%s3551_s4] ss:$2 sm:$0x3] (!%p516_p2) }
  0x15   : > { %s3589_s28 = smov (!%p574_p3, %s2426_s28), 1  ;;  %v762_v14 = vrot.slane %v2438_v13, %v2911_v4  ;;  %v766_v15 = vrot.slane %v2438_v13, %v2913_v5  ;;  %v806_v17 = vrot.slane %v801_v16, %v2911_v4  ;;  %v810_v18 = vrot.slane %v801_v16, %v2913_v5  ;;  %v2439_v19 = vld [vmem:[%s3551_s4 + $0x1] ss:$2 sm:$0x3]  ;;  %s3503_s25 = smov 96  }
  0x16   : > { %s3500_s0 = sshll.u32 %s3589_s28, 3  ;;  %704 = vrot.lane.b32.xlu1 %v699_v7, %s3519_s2  ;;  %v869_v20 = vrot.slane %v2439_v19, %v2911_v4  ;;  %v873_v21 = vrot.slane %v2439_v19, %v2913_v5  ;;  %v611_v24 = vld [vmem:[%s3551_s4] ss:$2 sm:$0x3]  ;;  %s3511_s26 = smov 95   ;;  %vm3531_vm15 = vcmask 900096  }
  0x17   : > { %s578_s21 = scalar_lea.vmem %s3552_s20, %s3500_s0  ;;  %v616_v28 = vrot.slane %v611_v24, %v2911_v4  ;;  %s3517_s20 = smov 126   ;;  %v620_v51 = vrot.slane %v611_v24, %v2913_v5  ;;  %vm923_vm1 = vcmask 1043456  }
  0x18   : > { %v589_v6 = vld [vmem:[%s578_s21] sm:$0xff]  ;;  %s3539_s21 = smov 112   ;;  %s3513_s0 = smov 110  }
  0x19   : > { %596 = vrot.lane.b32.xlu0 %v589_v6, %s3507_s22  ;;  %v595_v8 = vcombine.high %v589_v6, %v589_v6  ;;  %s3555_s3 = sld [smem:[#allocation7_spill]]  ;;  %s3560_s6 = sld [smem:[#allocation10_spill]] }
  0x1a   : > { %706 = vrot.lane.b32.xlu1 %v703_v9, %s3519_s2  ;;  %s3558_s2 = smov 126   ;;  %s3561_s5 = sld [smem:[#allocation9_spill]] }
  0x1b   : > { %s3563_s7 = sld [smem:[#allocation11_spill]] }
  0x1d   : > { %598 = vrot.lane.b32.xlu0 %v595_v8, %s3507_s22  ;;  %s3553_s22 = sld [smem:[#allocation6_spill]] }
  0x1e   : > { %665 = vrot.lane.b32.xlu1 %v662_v12, %s3526_s29 }
  0x21   : > { %663 = vrot.lane.b32.xlu0 %v658_v11, %s3526_s29 }
  0x22   : > { %769 = vrot.lane.b32.xlu1 %v766_v15, %s3521_s1 }
  0x25   : > { %767 = vrot.lane.b32.xlu0 %v762_v14, %s3521_s1  ;;  %s3559_s1 = smov 111  }
  0x26   : > { %813 = vrot.lane.b32.xlu1 %v810_v18, %s3505_s23 }
  0x29   : > { %811 = vrot.lane.b32.xlu0 %v806_v17, %s3505_s23  ;;  %s3556_s23 = smov 18  }
  0x2a   : > { %876 = vrot.lane.b32.xlu1 %v873_v21, %s3501_s24 }
  0x2d   : > { %874 = vrot.lane.b32.xlu0 %v869_v20, %s3501_s24  ;;  %s3509_s24 = smov 94  }
  0x88   : > { %v2955_v23 = vpop.permute.xlu1 %704 }
  0x8b   : > { %v597_v22 = vpop.permute.xlu0 %596 }
  0x8c   : > { %606 = vst.msk [vmem:[#allocation2] sm:$0xf] %vm605_vm2, %v597_v22  ;;  %v2962_v27 = vpop.permute.xlu1 %706  ;;  %vm919_vm2 = vcmask 293888  }
  0x8d   : > { %v709_v14 = vsel %vm708_vm6, %v2955_v23, %v2962_v27 }
  0x8f   : > { %v599_v25 = vpop.permute.xlu0 %598 }
  0x90   : > { %v601_v26 = vsel %vm600_vm3, %v597_v22, %v599_v25  ;;  %608 = vst.msk [vmem:[#allocation2 + $0x10] sm:$0xf] %vm590_vm0, %v599_v25  ;;  %v666_v32 = vpop.permute.xlu1 %665  ;;  %vm3523_vm0 = vcmask 769024  }
  0x91   : > { %607 = vst [vmem:[#allocation2 + $0x8] sm:$0xf] %v601_v26 }
  0x93   : > { %v609_v29 = vld [vmem:[#allocation2] sm:$0xf]  ;;  %v664_v31 = vpop.permute.xlu0 %663 }
  0x94   : > { %v649_v30 = vld [vmem:[#allocation2] sm:$0xf]  ;;  %v623_v35 = vmul.f32 %v616_v28, %v609_v29  ;;  %v770_v41 = vpop.permute.xlu1 %769  ;;  %v668_v6 = vsel %vm667_vm5, %v664_v31, %v666_v32 }
  0x95   : > { %v735_v33 = vld [vmem:[#allocation2] sm:$0xf]  ;;  %v672_v39 = vmul.f32 %v664_v31, %v649_v30 }
  0x96   : > { %v627_v34 = vld [vmem:[#allocation2] sm:$0xf]  ;;  %741 = vrot.lane.b32.xlu1 %v735_v33, %s3515_s30  ;;  %625 = vst [vmem:[#allocation3] sm:$0xf] %v623_v35 }
  0x97   : > { %v633_v36 = vrot.slane %v627_v34, 4  ;;  %v691_v37 = vld [vmem:[#allocation2] sm:$0xf]  ;;  %v693_v38 = vld [vmem:[#allocation2 + $0x10] sm:$0xf]  ;;  %v768_v49 = vpop.permute.xlu0 %767 }
  0x98   : > { %v651_v40 = vld [vmem:[#allocation2 + $0x10] sm:$0xf]  ;;  %v713_v45 = vmul.f32 %v2955_v23, %v691_v37  ;;  %v736_v50 = vld [vmem:[#allocation2 + $0x8] sm:$0xf]  ;;  %v814_v54 = vpop.permute.xlu1 %813  ;;  %v715_v8 = vmul.f32 %v2962_v27, %v693_v38  ;;  %v772_v15 = vsel %vm771_vm7, %v768_v49, %v770_v41  ;;  %v798_v19 = vld [vmem:[#allocation2] sm:$0xf] }
  0x99   : > { %636 = vrot.lane.b32.xlu0 %v633_v36, %s3541_s19  ;;  %v756_v42 = vld [vmem:[#allocation2 + $0x10] sm:$0xf]  ;;  %v610_v53 = vld [vmem:[#allocation2 + $0x8] sm:$0xf]  ;;  %v674_v59 = vmul.f32 %v666_v32, %v651_v40  ;;  %v754_v22 = vld [vmem:[#allocation2] sm:$0xf] }
  0x9a   : > { %v737_v43 = vld [vmem:[#allocation2 + $0x10] sm:$0xf]  ;;  %678 = vrot.lane.b32.xlu1 %v672_v39, %s3517_s20  ;;  %v719_v52 = vrot.slane %v713_v45, 4  ;;  %v624_v56 = vmul.f32 %v620_v51, %v610_v53  ;;  %v799_v62 = vld [vmem:[#allocation2 + $0x8] sm:$0xf]  ;;  %v778_v10 = vmul.f32 %v770_v41, %v756_v42  ;;  %v721_v13 = vrot.slane %v715_v8, 4 }
  0x9b   : > { %v800_v44 = vld [vmem:[#allocation2 + $0x10] sm:$0xf]  ;;  %v812_v57 = vpop.permute.xlu0 %811  ;;  %v628_v63 = vld [vmem:[#allocation2 + $0x8] sm:$0xf]  ;;  %v776_v24 = vmul.f32 %v768_v49, %v754_v22  ;;  %v839_v31 = vld [vmem:[#allocation2] sm:$0xf] }
  0x9c   : > { %v2969_v46 = vld [vmem:[#allocation2 + $0x10] sm:$0xf]  ;;  %v822_v58 = vmul.f32 %v814_v54, %v800_v44  ;;  %626 = vst [vmem:[#allocation3 + $0x8] sm:$0xf] %v624_v56  ;;  %v816_v60 = vsel %vm815_vm4, %v812_v57, %v814_v54  ;;  %v840_v1 = vld [vmem:[#allocation2 + $0x8] sm:$0xf]  ;;  %v820_v20 = vmul.f32 %v812_v57, %v798_v19  ;;  %v877_v26 = vpop.permute.xlu1 %876 }
  0x9d   : > { %v629_v47 = vld [vmem:[#allocation2 + $0x10] sm:$0xf]  ;;  %745 = vrot.lane.b32.xlu0 %v737_v43, %s3515_s30  ;;  %v821_v0 = vmul.f32 %v816_v60, %v799_v62  ;;  %v634_v3 = vrot.slane %v628_v63, 4  ;;  %v650_v7 = vld [vmem:[#allocation2 + $0x8] sm:$0xf]  ;;  %v846_v9 = vrot.slane %v840_v1, 4  ;;  %v885_v36 = vmul.f32 %v877_v26, %v2969_v46 }
  0x9e   : > { %v841_v48 = vld [vmem:[#allocation2 + $0x10] sm:$0xf]  ;;  %743 = vrot.lane.b32.xlu1 %v736_v50, %s3515_s30  ;;  %v635_v55 = vrot.slane %v629_v47, 4  ;;  %v673_v11 = vmul.f32 %v668_v6, %v650_v7  ;;  %v692_v12 = vld [vmem:[#allocation2 + $0x8] sm:$0xf]  ;;  %v784_v17 = vrot.slane %v778_v10, 4 }
  0x9f   : > { %1001 = vst.msk [vmem:[#allocation2 + $0x10] sm:$0xff] %vm600_vm3, %v2776_v2  ;;  %v847_v61 = vrot.slane %v841_v48, 4  ;;  %v755_v16 = vld [vmem:[#allocation2 + $0x8] sm:$0xf]  ;;  %v714_v18 = vmul.f32 %v709_v14, %v692_v12  ;;  %v875_v25 = vpop.permute.xlu0 %874  ;;  %v782_v29 = vrot.slane %v776_v24, 4  ;;  %v845_v33 = vrot.slane %v839_v31, 4 }
  0xa0   : > { %v777_v21 = vmul.f32 %v772_v15, %v755_v16  ;;  %v879_v28 = vsel %vm878_vm8, %v875_v25, %v877_v26  ;;  %v862_v30 = vld [vmem:[#allocation2 + $0x8] sm:$0xf]  ;;  %v861_v34 = vld [vmem:[#allocation2] sm:$0xf]  ;;  %v2791_v37 = vmov 0   ;;  %s3536_s30 = smov 120  }
  0xa1   : > { %722 = vrot.lane.b32.xlu0 %v719_v52, %s3539_s21  ;;  %v720_v23 = vrot.slane %v714_v18, 4  ;;  %v884_v32 = vmul.f32 %v879_v28, %v862_v30  ;;  %v883_v35 = vmul.f32 %v875_v25, %v861_v34  ;;  %2758 = vset.pattern.permute.xlu1 %v2791_v37  ;;  %v913_v38 = vld [vmem:[%s3553_s22] sm:$0xff]  ;;  %s3525_s22 = smov 10  }
  0xa2   : > { %640 = vrot.lane.b32.xlu1 %v635_v55, %s3541_s19  ;;  %v783_v27 = vrot.slane %v777_v21, 4  ;;  %2747 = vset.pattern.permute.xlu0 %v2791_v37  ;;  %v1058_v37 = vld [vmem:[%s3555_s3 + $0x88] sm:$0xff] }
  0xa5   : > { %830 = vrot.lane.b32.xlu0 %v822_v58, %s3503_s25 }
  0xa6   : > { %682 = vrot.lane.b32.xlu1 %v674_v59, %s3517_s20  ;;  %v3026_v34 = vld [vmem:[#allocation2 + $0x10] sm:$0xff] }
  0xa9   : > { %852 = vrot.lane.b32.xlu0 %v847_v61, %s3511_s26 }
  0xaa   : > { %828 = vrot.lane.b32.xlu1 %v821_v0, %s3503_s25 }
  0xad   : > { %638 = vrot.lane.b32.xlu0 %v634_v3, %s3541_s19 }
  0xae   : > { %850 = vrot.lane.b32.xlu1 %v846_v9, %s3511_s26 }
  0xb1   : > { %680 = vrot.lane.b32.xlu0 %v673_v11, %s3517_s20  ;;  %s3532_s20 = smov 119  }
  0xb2   : > { %726 = vrot.lane.b32.xlu1 %v721_v13, %s3539_s21 }
  0xb5   : > { %789 = vrot.lane.b32.xlu0 %v784_v17, %s3513_s0 }
  0xb6   : > { %826 = vrot.lane.b32.xlu1 %v820_v20, %s3503_s25  ;;  %s3554_s25 = sld [smem:[#allocation5_spill]] }
  0xb9   : > { %724 = vrot.lane.b32.xlu0 %v720_v23, %s3539_s21 }
  0xba   : > { %787 = vrot.lane.b32.xlu1 %v783_v27, %s3513_s0 }
  0xbc   : > { %v902_v31 = vld [vmem:[%s3554_s25] sm:$0xff]  ;;  %s3529_s25 = smov 9  }
  0xbd   : > { %785 = vrot.lane.b32.xlu0 %v782_v29, %s3513_s0  ;;  %s3557_s0 = smov 16  }
  0xbe   : > { %891 = vrot.lane.b32.xlu1 %v884_v32, %s3509_s24 }
  0xc1   : > { %848 = vrot.lane.b32.xlu0 %v845_v33, %s3511_s26  ;;  %s3528_s26 = smov 8  }
  0xc2   : > { %889 = vrot.lane.b32.xlu1 %v883_v35, %s3509_s24 }
  0xc5   : > { %893 = vrot.lane.b32.xlu0 %v885_v36, %s3509_s24  ;;  %v1057_v36 = vld [vmem:[%s3555_s3 + $0x80] sm:$0xff]  ;;  %s3534_s24 = smov 118  }
  0xc9   : > { %916 = vperm.xlu0 %2747, %v913_v38   ;;  %v1041_v38 = vld [vmem:[%s3555_s3] sm:$0xff] }
 0x108   : > { %v742_v39 = vpop.permute.xlu1 %741 }
 0x10b   : > { %v637_v40 = vpop.permute.xlu0 %636 }
 0x10c   : > { %v679_v41 = vpop.permute.xlu1 %678 }
 0x10f   : > { %v746_v42 = vpop.permute.xlu0 %745 }
 0x110   : > { %v744_v43 = vpop.permute.xlu1 %743 }
 0x111   : > { %v748_v44 = vsel %vm747_vm9, %v742_v39, %v744_v43  ;;  %v749_v45 = vsel %vm747_vm9, %v744_v43, %v746_v42  ;;  %v1042_v42 = vld [vmem:[%s3555_s3 + $0x8] sm:$0xff]  ;;  %v1059_v43 = vld [vmem:[%s3555_s3 + $0x90] sm:$0xff] }
 0x112   : > { %752 = vst [vmem:[#allocation3 + $0x20] sm:$0xf] %v748_v44  ;;  %753 = vst [vmem:[#allocation3 + $0x28] sm:$0xf] %v749_v45  ;;  %v1060_v44 = vld [vmem:[%s3555_s3 + $0x98] sm:$0xff] }
 0x113   : > { %v723_v46 = vpop.permute.xlu0 %722 }
 0x114   : > { %v641_v47 = vpop.permute.xlu1 %640 }
 0x117   : > { %v831_v48 = vpop.permute.xlu0 %830 }
 0x118   : > { %v683_v49 = vpop.permute.xlu1 %682 }
 0x11b   : > { %v853_v50 = vpop.permute.xlu0 %852 }
 0x11c   : > { %v829_v51 = vpop.permute.xlu1 %828 }
 0x11d   : > { %v834_v52 = vsel %vm3524_vm10, %v829_v51, %v831_v48  ;;  %v1043_v48 = vld [vmem:[%s3555_s3 + $0x10] sm:$0xff] }
 0x11e   : > { %838 = vst [vmem:[#allocation3 + $0x38] sm:$0xf] %v834_v52 }
 0x11f   : > { %v639_v53 = vpop.permute.xlu0 %638 }
 0x120   : > { %v643_v54 = vsel %vm642_vm11, %v637_v40, %v639_v53  ;;  %v644_v55 = vsel %vm642_vm11, %v639_v53, %v641_v47  ;;  %v851_v56 = vpop.permute.xlu1 %850  ;;  %v2593_v47 = vpack.c.bf16 %v1060_v44, %v1059_v43 }
 0x121   : > { %647 = vst [vmem:[#allocation3] sm:$0xf0] %v643_v54  ;;  %648 = vst [vmem:[#allocation3 + $0x8] sm:$0xf0] %v644_v55  ;;  %v856_v57 = vsel %vm854_vm12, %v851_v56, %v853_v50  ;;  %v1061_v50 = vld [vmem:[%s3555_s3 + $0xa0] sm:$0xff] }
 0x122   : > { %860 = vst [vmem:[#allocation3 + $0x38] sm:$0xf0] %v856_v57  ;;  %v1045_v55 = vld [vmem:[%s3555_s3 + $0x20] sm:$0xff]  ;;  %v1063_v57 = vld [vmem:[%s3555_s3 + $0xb0] sm:$0xff] }
 0x123   : > { %v681_v58 = vpop.permute.xlu0 %680 }
 0x124   : > { %v685_v59 = vsel %vm684_vm13, %v679_v41, %v681_v58  ;;  %v686_v60 = vsel %vm684_vm13, %v681_v58, %v683_v49  ;;  %v727_v61 = vpop.permute.xlu1 %726  ;;  %v2589_v41 = vpack.c.bf16 %v1058_v37, %v1057_v36  ;;  %v1044_v49 = vld [vmem:[%s3555_s3 + $0x18] sm:$0xff] }
 0x125   : > { %689 = vst [vmem:[#allocation3 + $0x10] sm:$0xf] %v685_v59  ;;  %690 = vst [vmem:[#allocation3 + $0x18] sm:$0xf] %v686_v60  ;;  %v2595_v53 = vpack.c.bf16 %v1044_v49, %v1043_v48  ;;  %v1064_v58 = vld [vmem:[%s3555_s3 + $0xb8] sm:$0xff] }
 0x126   : > { %2590 = vmatprep.subr.bf16.mxu1 %v2589_v41  ;;  %v2601_v60 = vpack.c.bf16 %v1064_v58, %v1063_v57 }
 0x127   : > { %v790_v62 = vpop.permute.xlu0 %789 }
 0x128   : > { %v827_v63 = vpop.permute.xlu1 %826  ;;  %v904_v13 = vld [vmem:[#allocation3 + $0x8] sm:$0xff]  ;;  %v903_v16 = vld [vmem:[#allocation3] sm:$0xff] }
 0x129   : > { %v833_v0 = vsel %vm3524_vm10, %v827_v63, %v829_v51  ;;  %v910_v24 = vld [vmem:[#allocation3 + $0x38] sm:$0xff]  ;;  %v1065_v63 = vld [vmem:[%s3555_s3 + $0xc0] sm:$0xff]  ;;  %vm1161_vm10 = vcmask 523264  }
 0x12a   : > { %837 = vst [vmem:[#allocation3 + $0x30] sm:$0xf] %v833_v0  ;;  %v1062_v51 = vld [vmem:[%s3555_s3 + $0xa8] sm:$0xff] }
 0x12b   : > { %v725_v1 = vpop.permute.xlu0 %724  ;;  %v2597_v54 = vpack.c.bf16 %v1062_v51, %v1061_v50  ;;  %v1066_v0 = vld [vmem:[%s3555_s3 + $0xc8] sm:$0xff]  ;;  %v2445_v50 = vld [vmem:[%s3489_s8] ss:$0 sm:$0xff] }
 0x12c   : > { %v729_v3 = vsel %vm3538_vm14, %v723_v46, %v725_v1  ;;  %v730_v6 = vsel %vm3538_vm14, %v725_v1, %v727_v61  ;;  %v788_v7 = vpop.permute.xlu1 %787  ;;  %v2591_v46 = vpack.c.bf16 %v1042_v42, %v1041_v38  ;;  %v1047_v61 = vld [vmem:[%s3555_s3 + $0x30] sm:$0xff] }
 0x12d   : > { %733 = vst [vmem:[#allocation3 + $0x10] sm:$0xf0] %v729_v3  ;;  %734 = vst [vmem:[#allocation3 + $0x18] sm:$0xf0] %v730_v6  ;;  %v793_v8 = vsel %vm3531_vm15, %v788_v7, %v790_v62  ;;  %v1048_v62 = vld [vmem:[%s3555_s3 + $0x38] sm:$0xff]  ;;  %v2605_v3 = vpack.c.bf16 %v1066_v0, %v1065_v63  ;;  %v1049_v6 = vld [vmem:[%s3555_s3 + $0x40] sm:$0xff] }
 0x12e   : > { %797 = vst [vmem:[#allocation3 + $0x28] sm:$0xf0] %v793_v8  ;;  %2592 = vmatpush3.bf16.msra.mxu1 %v2591_v46  ;;  %v2603_v1 = vpack.c.bf16 %v1048_v62, %v1047_v61  ;;  %v1067_v8 = vld [vmem:[%s3555_s3 + $0xd0] sm:$0xff]  ;;  %v1272_v0 = vld [vmem:[%s3560_s6] sm:$0xff] }
 0x12f   : > { %v786_v9 = vpop.permute.xlu0 %785  ;;  %2594 = vmatprep.subr.bf16.mxu1 %v2593_v47 }
 0x130   : > { %v792_v10 = vsel %vm3531_vm15, %v786_v9, %v788_v7  ;;  %v892_v11 = vpop.permute.xlu1 %891  ;;  %v1050_v7 = vld [vmem:[%s3555_s3 + $0x48] sm:$0xff]  ;;  %v1068_v9 = vld [vmem:[%s3555_s3 + $0xd8] sm:$0xff]  ;;  %vm1284_vm15 = vcmask 588800  }
 0x131   : > { %796 = vst [vmem:[#allocation3 + $0x20] sm:$0xf0] %v792_v10  ;;  %v2607_v10 = vpack.c.bf16 %v1050_v7, %v1049_v6 }
 0x132   : > { %2596 = vmatpush3.bf16.msra.mxu1 %v2595_v53 }
 0x133   : > { %v849_v12 = vpop.permute.xlu0 %848  ;;  %2598 = vmatprep.subr.bf16.mxu1 %v2597_v54 }
 0x134   : > { %v855_v14 = vsel %vm854_vm12, %v849_v12, %v851_v56  ;;  %v906_v15 = vld [vmem:[#allocation3 + $0x18] sm:$0xff]  ;;  %v905_v17 = vld [vmem:[#allocation3 + $0x10] sm:$0xff]  ;;  %v890_v18 = vpop.permute.xlu1 %889  ;;  %v1051_v12 = vld [vmem:[%s3555_s3 + $0x50] sm:$0xff] }
 0x135   : > { %859 = vst [vmem:[#allocation3 + $0x30] sm:$0xf0] %v855_v14  ;;  %v2581_v19 = vpack.c.bf16 %v906_v15, %v904_v13  ;;  %v2583_v20 = vpack.c.bf16 %v905_v17, %v903_v16  ;;  %v896_v21 = vsel %vm3523_vm0, %v890_v18, %v892_v11  ;;  %v908_v22 = vld [vmem:[#allocation3 + $0x28] sm:$0xff]  ;;  %v1046_v56 = vld [vmem:[%s3555_s3 + $0x28] sm:$0xff]  ;;  %v1069_v14 = vld [vmem:[%s3555_s3 + $0xe0] sm:$0xff] }
 0x136   : > { %900 = vst [vmem:[#allocation3 + $0x40] sm:$0xf] %v896_v21  ;;  %v2585_v26 = vpack.c.bf16 %v910_v24, %v908_v22  ;;  %v2599_v59 = vpack.c.bf16 %v1046_v56, %v1045_v55  ;;  %v1052_v13 = vld [vmem:[%s3555_s3 + $0x58] sm:$0xff]  ;;  %v1070_v15 = vld [vmem:[%s3555_s3 + $0xe8] sm:$0xff]  ;;  %v1053_v18 = vld [vmem:[%s3555_s3 + $0x60] sm:$0xff] }
 0x137   : > { %2582 = vmatprep.subr.bf16.mxu0 %v2581_v19  ;;  %v894_v25 = vpop.permute.xlu0 %893  ;;  %v2611_v16 = vpack.c.bf16 %v1052_v13, %v1051_v12  ;;  %v2613_v17 = vpack.c.bf16 %v1070_v15, %v1069_v14  ;;  %v1054_v19 = vld [vmem:[%s3555_s3 + $0x68] sm:$0xff]  ;;  %v1071_v21 = vld [vmem:[%s3555_s3 + $0xf0] sm:$0xff]  ;;  %v1072_v22 = vld [vmem:[%s3555_s3 + $0xf8] sm:$0xff] }
 0x138   : > { %v897_v23 = vsel %vm3523_vm0, %v892_v11, %v894_v25  ;;  %2584 = vmatpush1.bf16.msra.mxu0 %v2583_v20  ;;  %v907_v27 = vld [vmem:[#allocation3 + $0x20] sm:$0xff]  ;;  %2600 = vmatpush3.bf16.msra.mxu1 %v2599_v59  ;;  %v2609_v11 = vpack.c.bf16 %v1068_v9, %v1067_v8  ;;  %v2615_v20 = vpack.c.bf16 %v1054_v19, %v1053_v18  ;;  %vm1152_vm0 = vcmask 597064  }
 0x139   : > { %901 = vst [vmem:[#allocation3 + $0x48] sm:$0xf] %v897_v23  ;;  %2586 = vmatprep.subr.bf16.mxu0 %v2585_v26  ;;  %2602 = vmatprep.subr.bf16.mxu1 %v2601_v60  ;;  %v1055_v24 = vld [vmem:[%s3555_s3 + $0x70] sm:$0xff]  ;;  %v2617_v25 = vpack.c.bf16 %v1072_v22, %v1071_v21  ;;  %v1056_v26 = vld [vmem:[%s3555_s3 + $0x78] sm:$0xff] }
 0x13c   : > { %v909_v28 = vld [vmem:[#allocation3 + $0x30] sm:$0xff]  ;;  %2604 = vmatpush3.bf16.msra.mxu1 %v2603_v1 }
 0x13d   : > { %v2587_v29 = vpack.c.bf16 %v909_v28, %v907_v27  ;;  %v911_v32 = vld [vmem:[#allocation3 + $0x40] sm:$0xf]  ;;  %2606 = vmatprep.subr.bf16.mxu1 %v2605_v3  ;;  %v2619_v27 = vpack.c.bf16 %v1056_v26, %v1055_v24  ;;  %v1261_v1 = vld [vmem:[%s3561_s5] sm:$0xff]  ;;  %v1273_v3 = vld [vmem:[%s3560_s6 + $0x8] sm:$0xff]  ;;  %s3573_s6 = smov 17  }
 0x13f   : > { %2588 = vmatpush1.bf16.msra.mxu0 %v2587_v29 }
 0x140   : > { %v912_v30 = vld [vmem:[#allocation3 + $0x48] sm:$0xf]  ;;  %2608 = vmatpush3.bf16.msra.mxu1 %v2607_v10 }
 0x141   : > { %2440 = vmatprep.subr.msk.mxu0 %vm923_vm1, %v912_v30  ;;  %2610 = vmatprep.subr.bf16.mxu1 %v2609_v11 }
 0x143   : > { %2441 = vmatpush1.msk.msra.mxu0 %vm923_vm1, %v911_v32  ;;  %vm1144_vm1 = vcmask 72704  }
 0x144   : > { %2442 = vmatmul.mubr.msk.f32.vlgmr.msra.gmra.mrb[0].mxu0 %vm919_vm2, %v902_v31  ;;  %2612 = vmatpush3.bf16.msra.mxu1 %v2611_v16  ;;  %vm1146_vm2 = vcmask 671304  }
 0x145   : > { %2614 = vmatprep.subr.bf16.mxu1 %v2613_v17  ;;  %2552 = vmatprep.mubr.msk.f32.mxu0 %vm1284_vm15, %v1261_v1 }
 0x148   : > { %v917_v33 = vpop.permute.xlu0 %916  ;;  %2616 = vmatpush3.bf16.msra.mxu1 %v2615_v20 }
 0x149   : > { %2618 = vmatprep.subr.bf16.mxu1 %v2617_v25 }
 0x14c   : > { %2620 = vmatpush3.bf16.msra.mxu1 %v2619_v27  ;;  %v1262_v27 = vld [vmem:[%s3561_s5 + $0x8] sm:$0xff] }
 0x217   : > { %v996_v35 = vpop.f32.mrb[0].mxu0 }
 0x218   : > { %v3037_v39 = vadd.f32 %v996_v35, %v917_v33  ;;  %v998_v40 = vpop.f32.mrb[1].mxu0 }
 0x219   : > { %v3048_v45 = vadd.f32 %v998_v40, %v917_v33 }
 0x21a   : > { %1002 = vst [vmem:[#allocation2] sm:$0xff] %v3037_v39 }
 0x21b   : > { %v2748_v52 = vpack.i.bf16 %v3026_v34, %v3048_v45  ;;  %1145 = vst.msk [vmem:[#allocation2] sm:$0xff] %vm1144_vm1, %v2776_v2 }
 0x21c   : > { %1147 = vst.msk [vmem:[#allocation2] sm:$0xff] %vm1146_vm2, %v2776_v2 }
 0x21d   : > { %2749 = vrot.lane.b32.xlu1 %v2748_v52, %s3541_s19 }
 0x221   : > { %1010 = vrot.lane.b32.xlu1 %v3037_v39, %s3541_s19 }
 0x28f   : > { %v2750_v23 = vpop.permute.xlu1 %2749 }
 0x290   : > { %v2752_v28 = vunpack.i.h.bf16 %v2750_v23  ;;  %v2751_v29 = vunpack.i.l.bf16 %v2750_v23 }
 0x292   : > { %v1025_v30 = vmax.f32 %v3026_v34, %v2752_v28  ;;  %v1017_v31 = vsel %vm642_vm11, %v2751_v29, %v2752_v28 }
 0x293   : > { %v1011_v32 = vpop.permute.xlu1 %1010  ;;  %v1024_v33 = vmax.f32 %v3048_v45, %v1017_v31 }
 0x294   : > { %v1016_v35 = vsel %vm642_vm11, %v1011_v32, %v2751_v29 }
 0x295   : > { %v1020_v36 = vmax.f32 %v3037_v39, %v1016_v35  ;;  %v2753_v37 = vpack.i.bf16 %v1025_v30, %v1024_v33  ;;  %v2444_v39 = vld [vmem:[%s3489_s8 + $0x1] ss:$0 sm:$0xff]  ;;  %v1396_v35 = vld [vmem:[%s3563_s7 + $0x8] sm:$0xff] }
 0x297   : > { %2754 = vrot.lane.b32.xlu0 %v2753_v37, %s3539_s21  ;;  %1029 = vrot.lane.b32.xlu1 %v1020_v36, %s3539_s21 }
 0x29b   : > { %1176 = vrot.lane.b32.xlu1 %v2444_v39, %s3526_s29  ;;  %s3569_s29 = smov 10  }
 0x29f   : > { %1214 = vrot.lane.b32.xlu1 %v2444_v39, %s3525_s22  ;;  %s3565_s22 = smov 120  }
 0x2a3   : > { %1252 = vrot.lane.b32.xlu1 %v2444_v39, %s3556_s23  ;;  %v1401_v39 = vld [vmem:[%s3563_s7 + $0x30] sm:$0xff] }
 0x309   : > { %v2755_v38 = vpop.permute.xlu0 %2754  ;;  %v1030_v42 = vpop.permute.xlu1 %1029 }
 0x30a   : > { %v2757_v40 = vunpack.i.h.bf16 %v2755_v38  ;;  %v2756_v41 = vunpack.i.l.bf16 %v2755_v38 }
 0x30c   : > { %v1035_v34 = vsel %vm3538_vm14, %v1030_v42, %v2756_v41  ;;  %v1036_v43 = vsel %vm3538_vm14, %v2756_v41, %v2757_v40  ;;  %vm1366_vm14 = vcmask 597504   ;;  %v1398_v40 = vld [vmem:[%s3563_s7 + $0x18] sm:$0xff]  ;;  %v1399_v42 = vld [vmem:[%s3563_s7 + $0x20] sm:$0xff] }
 0x30d   : > { %v1039_v44 = vmax.f32 %v1020_v36, %v1035_v34  ;;  %v1040_v46 = vmax.f32 %v1024_v33, %v1036_v43  ;;  %v1177_v52 = vpop.permute.xlu1 %1176  ;;  %1368 = vst.msk [vmem:[#allocation2 + $0x18] sm:$0xff] %vm1366_vm14, %v2776_v2  ;;  %v1395_v33 = vld [vmem:[%s3563_s7] sm:$0xff]  ;;  %v1397_v36 = vld [vmem:[%s3563_s7 + $0x10] sm:$0xff]  ;;  %v1400_v34 = vld [vmem:[%s3563_s7 + $0x28] sm:$0xff] }
 0x30e   : > { %v2637_v38 = vpack.c.bf16 %v1396_v35, %v1395_v33  ;;  %v2641_v41 = vpack.c.bf16 %v1398_v40, %v1397_v36  ;;  %v2645_v43 = vpack.c.bf16 %v1400_v34, %v1399_v42  ;;  %v1767_v35 = vld [vmem:[%s3491_s10] sm:$0xff]  ;;  %v1848_v36 = vld [vmem:[%s3496_s15 + $0x8] sm:$0xff]  ;;  %v1854_v34 = vld [vmem:[%s3496_s15 + $0x38] sm:$0xff] }
 0x30f   : > { %1137 = vmatprep.mubr.f32.mxu1 %v1040_v46  ;;  %v1852_v42 = vld [vmem:[%s3496_s15 + $0x28] sm:$0xff] }
 0x310   : > { %1138 = vmatmul.mubr.f32.vlgmr.msra.gmra.mrb[0].mxu1 %v1039_v44 }
 0x311   : > { %v1215_v58 = vpop.permute.xlu1 %1214 }
 0x315   : > { %v1253_v62 = vpop.permute.xlu1 %1252 }
 0x3e3   : > { %v2506_v45 = vpop.f32.mrb[0].mxu1 }
 0x3e4   : > { %v2507_v47 = vpop.f32.mrb[1].mxu1 }
 0x3e5   : > { %v2508_v48 = vadd.f32 %v2507_v47, %v2506_v45  ;;  %v1402_v45 = vld [vmem:[%s3563_s7 + $0x38] sm:$0xff]  ;;  %s3577_s7 = smov 96  }
 0x3e6   : > { %v2649_v47 = vpack.c.bf16 %v1402_v45, %v1401_v39  ;;  %v1853_v39 = vld [vmem:[%s3496_s15 + $0x30] sm:$0xff]  ;;  %v1856_v45 = vld [vmem:[%s3496_s15 + $0x48] sm:$0xff] }
 0x3e7   : > { %v1143_v49 = vmax.f32 %v2508_v48, 0.0 }
 0x3e9   : > { %1149 = vrot.lane.b32.xlu0 %v1143_v49, %s3529_s25  ;;  %s3566_s25 = smov 9  }
 0x3ed   : > { %1192 = vrot.lane.b32.xlu0 %v2445_v50, %s3528_s26  ;;  %s3571_s26 = smov 118  }
 0x3f1   : > { %1230 = vrot.lane.b32.xlu0 %v2445_v50, %s3557_s0 }
 0x45b   : > { %v1150_v51 = vpop.permute.xlu0 %1149 }
 0x45c   : > { %1153 = vst.msk [vmem:[#allocation2] sm:$0xff] %vm1152_vm0, %v1150_v51 }
 0x45f   : > { %v1193_v55 = vpop.permute.xlu0 %1192 }
 0x463   : > { %v1154_v53 = vld [vmem:[#allocation2] sm:$0xff]  ;;  %v1231_v60 = vpop.permute.xlu0 %1230 }
 0x464   : > { %v1160_v54 = vmul.f32 %v2445_v50, %v1154_v53  ;;  %1165 = vrot.lane.b32.xlu0 %v1154_v53, %s3541_s19  ;;  %v1179_v56 = vmul.f32 %v1177_v52, %v1154_v53  ;;  %v1195_v57 = vmul.f32 %v1193_v55, %v1154_v53  ;;  %v1217_v59 = vmul.f32 %v1215_v58, %v1154_v53  ;;  %s3564_s19 = smov 127   ;;  %v1488_v58 = vld [vmem:[%s3492_s11] sm:$0xff] }
 0x465   : > { %v1233_v61 = vmul.f32 %v1231_v60, %v1154_v53  ;;  %v1255_v63 = vmul.f32 %v1253_v62, %v1154_v53  ;;  %1367 = vst.msk [vmem:[#allocation2] sm:$0xff] %vm1366_vm14, %v2776_v2  ;;  %vm1938_vm14 = vcmask 277640  }
 0x466   : > { %1162 = vst.msk [vmem:[#allocation3] sm:$0xff] %vm1161_vm10, %v1160_v54  ;;  %1181 = vrot.lane.b32.xlu1 %v1179_v56, %s3558_s2 }
 0x467   : > { %1939 = vst.msk [vmem:[#allocation2 + $0x10] sm:$0xff] %vm1938_vm14, %v2776_v2 }
 0x468   : > { %1197 = vrot.lane.b32.xlu0 %v1195_v57, %s3536_s30  ;;  %s3574_s30 = smov 32  }
 0x46a   : > { %1203 = vrot.lane.b32.xlu1 %v1154_v53, %s3532_s20  ;;  %s3562_s20 = smov 110  }
 0x46c   : > { %1219 = vrot.lane.b32.xlu0 %v1217_v59, %s3534_s24  ;;  %v1489_v59 = vld [vmem:[%s3492_s11 + $0x8] sm:$0xff]  ;;  %s3567_s24 = smov 8  }
 0x46d   : > { %v1263_v11 = vld [vmem:[#allocation3] sm:$0xff]  ;;  %v2653_v60 = vpack.c.bf16 %v1489_v59, %v1488_v58 }
 0x46e   : > { %1235 = vrot.lane.b32.xlu1 %v1233_v61, %s3539_s21  ;;  %s2472_s21 = sshll.u32 %s3589_s28, 4 }
 0x46f   : > { %2654 = vmatprep.subr.bf16.mxu1 %v2653_v60  ;;  %s583_s4 = scalar_lea.vmem %s3498_s17, %s2472_s21  ;;  %s3587_s21 = sshll.u32 %s3589_s28, 3 }
 0x470   : > { %1241 = vrot.lane.b32.xlu0 %v1154_v53, %s3559_s1  ;;  %2656 = vmatpush3.bf16.msra.mxu1 %v2653_v60 }
 0x472   : > { %1257 = vrot.lane.b32.xlu1 %v1255_v63, %s3562_s20 }
 0x474   : > { %1276 = vperm.xlu0 %2747, %v1272_v0  }
 0x476   : > { %1281 = vperm.xlu1 %2758, %v1273_v3  }
 0x4d6   : > { %v1166_v6 = vpop.permute.xlu0 %1165 }
 0x4d7   : > { %1168 = vst.msk [vmem:[#allocation3 + $0x10] sm:$0xff] %vm1161_vm10, %v1166_v6  ;;  %v2457_v6 = vld [vmem:[%s3493_s12] ss:$0 sm:$0xff] }
 0x4d8   : > { %v1182_v7 = vpop.permute.xlu1 %1181 }
 0x4d9   : > { %1184 = vst.msk [vmem:[#allocation3 + $0x20] sm:$0xff] %vm1161_vm10, %v1182_v7  ;;  %v2456_v7 = vld [vmem:[%s3493_s12 + $0x1] ss:$0 sm:$0xff] }
 0x4da   : > { %v1198_v8 = vpop.permute.xlu0 %1197 }
 0x4db   : > { %1200 = vst.msk [vmem:[#allocation3 + $0x30] sm:$0xff] %vm1161_vm10, %v1198_v8  ;;  %v2798_v8 = vmov 0.0|0.0  }
 0x4dc   : > { %v1204_v9 = vpop.permute.xlu1 %1203  ;;  %2657 = vmatprep.subr.bf16.mxu1 %v2798_v8 }
 0x4dd   : > { %1206 = vst.msk [vmem:[#allocation3 + $0x40] sm:$0xff] %vm1161_vm10, %v1204_v9 }
 0x4de   : > { %v1220_v10 = vpop.permute.xlu0 %1219  ;;  %v1264_v12 = vld [vmem:[#allocation3 + $0x10] sm:$0xff] }
 0x4df   : > { %1222 = vst.msk [vmem:[#allocation3 + $0x50] sm:$0xff] %vm1161_vm10, %v1220_v10  ;;  %v2621_v13 = vpack.c.bf16 %v1264_v12, %v1263_v11 }
 0x4e0   : > { %v1236_v14 = vpop.permute.xlu1 %1235  ;;  %v1265_v16 = vld [vmem:[#allocation3 + $0x20] sm:$0xff] }
 0x4e1   : > { %2622 = vmatprep.subr.bf16.mxu0 %v2621_v13  ;;  %1238 = vst.msk [vmem:[#allocation3 + $0x60] sm:$0xff] %vm1161_vm10, %v1236_v14 }
 0x4e2   : > { %v1242_v15 = vpop.permute.xlu0 %1241  ;;  %2624 = vmatpush3.bf16.msra.mxu0 %v2621_v13  ;;  %v1266_v17 = vld [vmem:[#allocation3 + $0x30] sm:$0xff] }
 0x4e3   : > { %1244 = vst.msk [vmem:[#allocation3 + $0x70] sm:$0xff] %vm1161_vm10, %v1242_v15  ;;  %v2625_v18 = vpack.c.bf16 %v1266_v17, %v1265_v16 }
 0x4e4   : > { %v1258_v19 = vpop.permute.xlu1 %1257  ;;  %v1267_v20 = vld [vmem:[#allocation3 + $0x40] sm:$0xff] }
 0x4e5   : > { %2626 = vmatprep.subr.bf16.mxu0 %v2625_v18  ;;  %1260 = vst.msk [vmem:[#allocation3 + $0x80] sm:$0xff] %vm1161_vm10, %v1258_v19 }
 0x4e6   : > { %2628 = vmatpush3.bf16.msra.mxu0 %v2625_v18  ;;  %v1268_v21 = vld [vmem:[#allocation3 + $0x50] sm:$0xff] }
 0x4e7   : > { %v2629_v22 = vpack.c.bf16 %v1268_v21, %v1267_v20 }
 0x4e8   : > { %v1269_v24 = vld [vmem:[#allocation3 + $0x60] sm:$0xff] }
 0x4e9   : > { %2630 = vmatprep.subr.bf16.mxu0 %v2629_v22 }
 0x4ea   : > { %2632 = vmatpush3.bf16.msra.mxu0 %v2629_v22  ;;  %v1270_v25 = vld [vmem:[#allocation3 + $0x70] sm:$0xff] }
 0x4eb   : > { %v2633_v26 = vpack.c.bf16 %v1270_v25, %v1269_v24 }
 0x4ec   : > { %v1271_v23 = vld [vmem:[#allocation3 + $0x80] sm:$0xff] }
 0x4ed   : > { %2634 = vmatprep.subr.bf16.mxu0 %v2633_v26 }
 0x4ee   : > { %2636 = vmatpush3.bf16.msra.mxu0 %v2633_v26 }
 0x4ef   : > { %2550 = vmatprep.subr.mxu0 %v1271_v23 }
 0x4f2   : > { %2551 = vmatpush3.msra.mxu0 %v1271_v23 }
 0x4f3   : > { %2553 = vmatmul.mubr.msk.f32.vlgmr.msra.gmra.mrb[2].mxu0 %vm1284_vm15, %v1262_v27  ;;  %v1277_v30 = vpop.permute.xlu0 %1276  ;;  %2638 = vmatprep.subr.bf16.mxu0 %v2637_v38 }
 0x4f4   : > { %2640 = vmatpush3.bf16.msra.mxu0 %v2637_v38  ;;  %v1847_v38 = vld [vmem:[%s3496_s15] sm:$0xff] }
 0x4f5   : > { %v1282_v28 = vpop.permute.xlu1 %1281  ;;  %2642 = vmatprep.subr.bf16.mxu0 %v2641_v41 }
 0x4f8   : > { %2644 = vmatpush3.bf16.msra.mxu0 %v2641_v41  ;;  %v1849_v41 = vld [vmem:[%s3496_s15 + $0x10] sm:$0xff] }
 0x4f9   : > { %2646 = vmatprep.subr.bf16.mxu0 %v2645_v43 }
 0x4fc   : > { %2648 = vmatpush3.bf16.msra.mxu0 %v2645_v43  ;;  %v2686_v43 = vpack.c.bf16 %v1849_v41, %v1847_v38  ;;  %v1861_v38 = vld [vmem:[%s3496_s15 + $0x70] sm:$0xff] }
 0x4fd   : > { %2650 = vmatprep.subr.bf16.mxu0 %v2649_v47 }
 0x500   : > { %2652 = vmatpush3.bf16.msra.mxu0 %v2649_v47  ;;  %v1858_v47 = vld [vmem:[%s3496_s15 + $0x58] sm:$0xff] }
 0x5c6   : > { %v2554_v29 = vpop.f32.mrb[2].mxu0 }
 0x5c7   : > { %v1363_v31 = vadd.f32 %v2554_v29, %v1282_v28  ;;  %v1357_v32 = vpop.f32.mrb[3].mxu0 }
 0x5c8   : > { %v1358_v37 = vadd.f32 %v1357_v32, %v1277_v30  ;;  %v1748_v32 = vld [vmem:[%s3490_s9 + $0x8] sm:$0xff] }
 0x5c9   : > { %1370 = vst.msk [vmem:[#allocation2 + $0x18] sm:$0xff] %vm1161_vm10, %v1363_v31 }
 0x5ca   : > { %1369 = vst.msk [vmem:[#allocation2] sm:$0xff] %vm1161_vm10, %v1358_v37 }
 0x5d0   : > { %v1372_v44 = vld [vmem:[#allocation2 + $0x18] sm:$0xff] }
 0x5d1   : > { %1377 = vrot.lane.b32.xlu1 %v1372_v44, %s3564_s19  ;;  %1572 = vst.msk [vmem:[#allocation2 + $0x18] sm:$0xff] %vm1144_vm1, %v2776_v2  ;;  %v1371_v46 = vld [vmem:[#allocation2] sm:$0xff] }
 0x5d2   : > { %1574 = vst.msk [vmem:[#allocation2 + $0x18] sm:$0xff] %vm1146_vm2, %v2776_v2  ;;  %1375 = vrot.lane.b32.xlu0 %v1371_v46, %s3564_s19 }
 0x5d3   : > { %1571 = vst.msk [vmem:[#allocation2] sm:$0xff] %vm1144_vm1, %v2776_v2 }
 0x5d4   : > { %1573 = vst.msk [vmem:[#allocation2] sm:$0xff] %vm1146_vm2, %v2776_v2 }
 0x643   : > { %v1378_v48 = vpop.permute.xlu1 %1377 }
 0x644   : > { %v1384_v49 = vmax.f32 %v1372_v44, %v1378_v48  ;;  %v1376_v50 = vpop.permute.xlu0 %1375  ;;  %v1382_v54 = vmax.f32 %v1363_v31, %v1378_v48  ;;  %v2688_v44 = vpack.c.bf16 %v1854_v34, %v1852_v42 }
 0x645   : > { %v1383_v51 = vmax.f32 %v1371_v46, %v1376_v50  ;;  %v1381_v52 = vmax.f32 %v1358_v37, %v1376_v50  ;;  %v1850_v37 = vld [vmem:[%s3496_s15 + $0x18] sm:$0xff]  ;;  %v1851_v46 = vld [vmem:[%s3496_s15 + $0x20] sm:$0xff] }
 0x646   : > { %1389 = vrot.lane.b32.xlu1 %v1384_v49, %s3565_s22  ;;  %v2684_v40 = vpack.c.bf16 %v1850_v37, %v1848_v36  ;;  %v2690_v48 = vpack.c.bf16 %v1853_v39, %v1851_v46  ;;  %v2692_v49 = vpack.c.bf16 %v1858_v47, %v1856_v45  ;;  %v1855_v50 = vld [vmem:[%s3496_s15 + $0x40] sm:$0xff]  ;;  %v1862_v36 = vld [vmem:[%s3496_s15 + $0x78] sm:$0xff] }
 0x647   : > { %1387 = vrot.lane.b32.xlu0 %v1383_v51, %s3565_s22  ;;  %v1857_v51 = vld [vmem:[%s3496_s15 + $0x50] sm:$0xff]  ;;  %v2463_v46 = vld [vmem:[%s3497_s16 + $0x1] ss:$2 sm:$0x3] }
 0x648   : > { %2685 = vmatprep.subr.bf16.mxu0 %v2684_v40  ;;  %v1999_v47 = vrot.slane %v2463_v46, %v2911_v4 }
 0x6b8   : > { %v1390_v53 = vpop.permute.xlu1 %1389 }
 0x6b9   : > { %v1388_v55 = vpop.permute.xlu0 %1387  ;;  %v1394_v57 = vmax.f32 %v1382_v54, %v1390_v53 }
 0x6ba   : > { %v1393_v56 = vmax.f32 %v1381_v52, %v1388_v55  ;;  %v2694_v52 = vpack.c.bf16 %v1857_v51, %v1855_v50  ;;  %v2464_v51 = vld [vmem:[%s3497_s16 + $0x1] ss:$2 sm:$0x3] }
 0x6bc   : > { %2571 = vmatprep.mubr.msk.f32.mxu0 %vm1161_vm10, %v1393_v56 }
 0x6bd   : > { %2572 = vmatmul.mubr.msk.f32.vlgmr.msra.gmra.mrb[4].mxu0 %vm1161_vm10, %v1394_v57 }
 0x6be   : > { %1930 = vmatprep.mubr.f32.mxu0 %v2776_v2  ;;  %2687 = vmatpush1.bf16.msra.mxu0 %v2686_v43 }
 0x6bf   : > { %2689 = vmatprep.subr.bf16.mxu0 %v2688_v44 }
 0x6c2   : > { %2691 = vmatpush1.bf16.msra.mxu0 %v2690_v48  ;;  %v2003_v48 = vrot.slane %v2463_v46, %v2913_v5 }
 0x6c3   : > { %2693 = vmatprep.subr.bf16.mxu0 %v2692_v49  ;;  %v2033_v49 = vld [vmem:[%s3497_s16] ss:$2 sm:$0x3] }
 0x6c4   : > { %v2042_v50 = vrot.slane %v2033_v49, %v2913_v5 }
 0x6c6   : > { %2695 = vmatpush1.bf16.msra.mxu0 %v2694_v52  ;;  %v2095_v52 = vrot.slane %v2464_v51, %v2911_v4 }
 0x790   : > { %v2573_v61 = vpop.f32.mrb[4].mxu0 }
 0x791   : > { %v1485_v62 = vmax.f32 %v2573_v61, 0.0  ;;  %v1475_v63 = vpop.f32.mrb[5].mxu0 }
 0x792   : > { %v1484_v0 = vmax.f32 %v1475_v63, 0.0 }
 0x793   : > { %1487 = vst.msk [vmem:[%s583_s4 + $0x8] sm:$0xff] %vm708_vm6, %v1485_v62 }
 0x794   : > { %1486 = vst.msk [vmem:[%s583_s4] sm:$0xff] %vm708_vm6, %v1484_v0  ;;  %2578 = vmatprep.mubr.msk.f32.mxu1 %vm708_vm6, %v1484_v0  ;;  %s3568_s4 = smov 2  }
 0x795   : > { %2579 = vmatmul.mubr.msk.f32.vlgmr.msra.gmra.mrb[2].mxu1 %vm708_vm6, %v1485_v62 }
 0x796   : > { %2461 = vmatprep.mubr.msk.f32.mxu1 %vm708_vm6, %v1748_v32 }
 0x868   : > { %v2580_v1 = vpop.f32.mrb[2].mxu1 }
 0x869   : > { %1579 = vrot.lane.b32.xlu1 %v2580_v1, %s3566_s25  ;;  %v1562_v3 = vpop.f32.mrb[3].mxu1 }
 0x86a   : > { %1577 = vrot.lane.b32.xlu0 %v1562_v3, %s3566_s25  ;;  %s3570_s25 = smov 119  }
 0x86d   : > { %1639 = vrot.lane.b32.xlu1 %v2457_v6, %s3567_s24 }
 0x86e   : > { %1616 = vrot.lane.b32.xlu0 %v2456_v7, %s3568_s4 }
 0x871   : > { %1697 = vrot.lane.b32.xlu1 %v2457_v6, %s3557_s0 }
 0x872   : > { %1674 = vrot.lane.b32.xlu0 %v2456_v7, %s3569_s29 }
 0x876   : > { %1732 = vrot.lane.b32.xlu0 %v2456_v7, %s3556_s23 }
 0x8db   : > { %v1580_v9 = vpop.permute.xlu1 %1579 }
 0x8dc   : > { %1584 = vst.msk [vmem:[#allocation2 + $0x18] sm:$0xff] %vm1152_vm0, %v1580_v9  ;;  %v1578_v10 = vpop.permute.xlu0 %1577 }
 0x8dd   : > { %1583 = vst.msk [vmem:[#allocation2] sm:$0xff] %vm1152_vm0, %v1578_v10 }
 0x8df   : > { %v1640_v18 = vpop.permute.xlu1 %1639 }
 0x8e0   : > { %v1617_v15 = vpop.permute.xlu0 %1616 }
 0x8e3   : > { %v1586_v11 = vld [vmem:[#allocation2 + $0x18] sm:$0xff]  ;;  %v1698_v23 = vpop.permute.xlu1 %1697 }
 0x8e4   : > { %v1593_v12 = vmul.f32 %v2457_v6, %v1586_v11  ;;  %v1585_v13 = vld [vmem:[#allocation2] sm:$0xff]  ;;  %1602 = vrot.lane.b32.xlu0 %v1586_v11, %s3564_s19  ;;  %v1620_v16 = vmul.f32 %v1617_v15, %v1586_v11  ;;  %v1643_v19 = vmul.f32 %v1640_v18, %v1586_v11  ;;  %v1675_v24 = vpop.permute.xlu0 %1674  ;;  %v1701_v28 = vmul.f32 %v1698_v23, %v1586_v11 }
 0x8e5   : > { %v1592_v14 = vmul.f32 %v2457_v6, %v1585_v13  ;;  %1600 = vrot.lane.b32.xlu1 %v1585_v13, %s3564_s19  ;;  %1937 = vst.msk [vmem:[#allocation2] sm:$0xff] %vm600_vm3, %v2776_v2  ;;  %v1619_v17 = vmul.f32 %v1617_v15, %v1585_v13  ;;  %v1642_v20 = vmul.f32 %v1640_v18, %v1585_v13 }
 0x8e6   : > { %1595 = vst.msk [vmem:[#allocation3 + $0x10] sm:$0xff] %vm1161_vm10, %v1593_v12  ;;  %v1678_v26 = vmul.f32 %v1675_v24, %v1586_v11  ;;  %v1677_v27 = vmul.f32 %v1675_v24, %v1585_v13  ;;  %v1700_v29 = vmul.f32 %v1698_v23, %v1585_v13 }
 0x8e7   : > { %1594 = vst.msk [vmem:[#allocation3] sm:$0xff] %vm1161_vm10, %v1592_v14 }
 0x8e8   : > { %1625 = vrot.lane.b32.xlu0 %v1620_v16, %s3558_s2  ;;  %v1733_v30 = vpop.permute.xlu0 %1732 }
 0x8e9   : > { %1623 = vrot.lane.b32.xlu1 %v1619_v17, %s3558_s2  ;;  %v1736_v31 = vmul.f32 %v1733_v30, %v1586_v11  ;;  %v1735_v33 = vmul.f32 %v1733_v30, %v1585_v13 }
 0x8ec   : > { %1648 = vrot.lane.b32.xlu0 %v1643_v19, %s3565_s22 }
 0x8ed   : > { %1646 = vrot.lane.b32.xlu1 %v1642_v20, %s3565_s22  ;;  %v1750_v21 = vld [vmem:[#allocation3 + $0x10] sm:$0xff]  ;;  %s3572_s22 = smov 112  }
 0x8ee   : > { %v1749_v22 = vld [vmem:[#allocation3] sm:$0xff] }
 0x8ef   : > { %v2658_v25 = vpack.c.bf16 %v1750_v21, %v1749_v22 }
 0x8f0   : > { %1660 = vrot.lane.b32.xlu0 %v1586_v11, %s3570_s25 }
 0x8f1   : > { %1658 = vrot.lane.b32.xlu1 %v1585_v13, %s3570_s25  ;;  %2659 = vmatpush1.bf16.msra.mxu1 %v2658_v25  ;;  %s588_s25 = scalar_lea.vmem %s3499_s18, %s3587_s21 }
 0x8f2   : > { %2660 = vmatprep.subr.bf16.mxu1 %v2798_v8 }
 0x8f4   : > { %1683 = vrot.lane.b32.xlu0 %v1678_v26, %s3571_s26 }
 0x8f5   : > { %1681 = vrot.lane.b32.xlu1 %v1677_v27, %s3571_s26 }
 0x8f8   : > { %1706 = vrot.lane.b32.xlu0 %v1701_v28, %s3572_s22 }
 0x8f9   : > { %1704 = vrot.lane.b32.xlu1 %v1700_v29, %s3572_s22 }
 0x8fc   : > { %1718 = vrot.lane.b32.xlu0 %v1586_v11, %s3559_s1 }
 0x8fd   : > { %1716 = vrot.lane.b32.xlu1 %v1585_v13, %s3559_s1 }
 0x900   : > { %1741 = vrot.lane.b32.xlu0 %v1736_v31, %s3562_s20 }
 0x901   : > { %1739 = vrot.lane.b32.xlu1 %v1735_v33, %s3562_s20  ;;  %v1747_v33 = vld [vmem:[%s3490_s9] sm:$0xff] }
 0x905   : > { %1770 = vperm.xlu1 %2758, %v1767_v35   ;;  %v1860_v35 = vld [vmem:[%s3496_s15 + $0x68] sm:$0xff] }
 0x906   : > { %v2696_v37 = vpack.c.bf16 %v1862_v36, %v1860_v35 }
 0x908   : > { %2697 = vmatprep.subr.bf16.mxu0 %v2696_v37 }
 0x956   : > { %v1603_v53 = vpop.permute.xlu0 %1602 }
 0x957   : > { %1607 = vst.msk [vmem:[#allocation3 + $0x30] sm:$0xff] %vm1161_vm10, %v1603_v53  ;;  %v1601_v54 = vpop.permute.xlu1 %1600  ;;  %v2099_v53 = vrot.slane %v2464_v51, %v2913_v5 }
 0x958   : > { %1606 = vst.msk [vmem:[#allocation3 + $0x20] sm:$0xff] %vm1161_vm10, %v1601_v54  ;;  %v2129_v54 = vld [vmem:[%s3497_s16] ss:$2 sm:$0x3] }
 0x95a   : > { %v1626_v55 = vpop.permute.xlu0 %1625 }
 0x95b   : > { %1630 = vst.msk [vmem:[#allocation3 + $0x50] sm:$0xff] %vm1161_vm10, %v1626_v55  ;;  %v1624_v56 = vpop.permute.xlu1 %1623  ;;  %v2134_v55 = vrot.slane %v2129_v54, %v2911_v4 }
 0x95c   : > { %1629 = vst.msk [vmem:[#allocation3 + $0x40] sm:$0xff] %vm1161_vm10, %v1624_v56  ;;  %v2138_v56 = vrot.slane %v2129_v54, %v2913_v5 }
 0x95e   : > { %v1649_v57 = vpop.permute.xlu0 %1648  ;;  %v1752_v58 = vld [vmem:[#allocation3 + $0x30] sm:$0xff] }
 0x95f   : > { %1653 = vst.msk [vmem:[#allocation3 + $0x70] sm:$0xff] %vm1161_vm10, %v1649_v57  ;;  %v1647_v59 = vpop.permute.xlu1 %1646  ;;  %v1751_v60 = vld [vmem:[#allocation3 + $0x20] sm:$0xff]  ;;  %v2465_v57 = vld [vmem:[%s3497_s16 + $0x1] ss:$2 sm:$0x3] }
 0x960   : > { %1652 = vst.msk [vmem:[#allocation3 + $0x60] sm:$0xff] %vm1161_vm10, %v1647_v59  ;;  %v2661_v61 = vpack.c.bf16 %v1752_v58, %v1751_v60  ;;  %v2191_v58 = vrot.slane %v2465_v57, %v2911_v4  ;;  %v2195_v59 = vrot.slane %v2465_v57, %v2913_v5  ;;  %v1956_v60 = vld [vmem:[%s3497_s16] ss:$2 sm:$0x3] }
 0x962   : > { %v1661_v62 = vpop.permute.xlu0 %1660  ;;  %2662 = vmatpush1.bf16.msra.mxu1 %v2661_v61  ;;  %v1754_v63 = vld [vmem:[#allocation3 + $0x50] sm:$0xff]  ;;  %v1965_v61 = vrot.slane %v1956_v60, %v2913_v5 }
 0x963   : > { %1665 = vst.msk [vmem:[#allocation3 + $0x90] sm:$0xff] %vm1161_vm10, %v1661_v62  ;;  %v1659_v0 = vpop.permute.xlu1 %1658  ;;  %2663 = vmatprep.subr.bf16.mxu1 %v2798_v8  ;;  %v1753_v1 = vld [vmem:[#allocation3 + $0x40] sm:$0xff] }
 0x964   : > { %1664 = vst.msk [vmem:[#allocation3 + $0x80] sm:$0xff] %vm1161_vm10, %v1659_v0  ;;  %v2664_v3 = vpack.c.bf16 %v1754_v63, %v1753_v1 }
 0x966   : > { %v1684_v6 = vpop.permute.xlu0 %1683  ;;  %2665 = vmatpush1.bf16.msra.mxu1 %v2664_v3  ;;  %v1756_v7 = vld [vmem:[#allocation3 + $0x70] sm:$0xff]  ;;  %v1961_v3 = vrot.slane %v1956_v60, %v2911_v4 }
 0x967   : > { %1688 = vst.msk [vmem:[#allocation3 + $0xb0] sm:$0xff] %vm1161_vm10, %v1684_v6  ;;  %v1682_v9 = vpop.permute.xlu1 %1681  ;;  %2666 = vmatprep.subr.bf16.mxu1 %v2798_v8  ;;  %v1755_v10 = vld [vmem:[#allocation3 + $0x60] sm:$0xff] }
 0x968   : > { %1687 = vst.msk [vmem:[#allocation3 + $0xa0] sm:$0xff] %vm1161_vm10, %v1682_v9  ;;  %v2667_v11 = vpack.c.bf16 %v1756_v7, %v1755_v10 }
 0x96a   : > { %v1707_v12 = vpop.permute.xlu0 %1706  ;;  %2668 = vmatpush1.bf16.msra.mxu1 %v2667_v11  ;;  %v1758_v13 = vld [vmem:[#allocation3 + $0x90] sm:$0xff] }
 0x96b   : > { %1711 = vst.msk [vmem:[#allocation3 + $0xd0] sm:$0xff] %vm1161_vm10, %v1707_v12  ;;  %v1705_v14 = vpop.permute.xlu1 %1704  ;;  %2669 = vmatprep.subr.bf16.mxu1 %v2798_v8  ;;  %v1757_v15 = vld [vmem:[#allocation3 + $0x80] sm:$0xff] }
 0x96c   : > { %1710 = vst.msk [vmem:[#allocation3 + $0xc0] sm:$0xff] %vm1161_vm10, %v1705_v14  ;;  %v2670_v16 = vpack.c.bf16 %v1758_v13, %v1757_v15 }
 0x96e   : > { %v1719_v17 = vpop.permute.xlu0 %1718  ;;  %2671 = vmatpush1.bf16.msra.mxu1 %v2670_v16  ;;  %v1760_v18 = vld [vmem:[#allocation3 + $0xb0] sm:$0xff] }
 0x96f   : > { %1723 = vst.msk [vmem:[#allocation3 + $0xf0] sm:$0xff] %vm1161_vm10, %v1719_v17  ;;  %v1717_v19 = vpop.permute.xlu1 %1716  ;;  %2672 = vmatprep.subr.bf16.mxu1 %v2798_v8  ;;  %v1759_v20 = vld [vmem:[#allocation3 + $0xa0] sm:$0xff] }
 0x970   : > { %1722 = vst.msk [vmem:[#allocation3 + $0xe0] sm:$0xff] %vm1161_vm10, %v1717_v19  ;;  %v2673_v21 = vpack.c.bf16 %v1760_v18, %v1759_v20 }
 0x972   : > { %v1742_v22 = vpop.permute.xlu0 %1741  ;;  %2674 = vmatpush1.bf16.msra.mxu1 %v2673_v21  ;;  %v1762_v24 = vld [vmem:[#allocation3 + $0xd0] sm:$0xff] }
 0x973   : > { %1746 = vst.msk [vmem:[#allocation3 + $0x110] sm:$0xff] %vm1161_vm10, %v1742_v22  ;;  %v1740_v25 = vpop.permute.xlu1 %1739  ;;  %2675 = vmatprep.subr.bf16.mxu1 %v2798_v8  ;;  %v1761_v26 = vld [vmem:[#allocation3 + $0xc0] sm:$0xff] }
 0x974   : > { %1745 = vst.msk [vmem:[#allocation3 + $0x100] sm:$0xff] %vm1161_vm10, %v1740_v25  ;;  %v2676_v23 = vpack.c.bf16 %v1762_v24, %v1761_v26 }
 0x976   : > { %2677 = vmatpush1.bf16.msra.mxu1 %v2676_v23  ;;  %v1764_v27 = vld [vmem:[#allocation3 + $0xf0] sm:$0xff] }
 0x977   : > { %2678 = vmatprep.subr.bf16.mxu1 %v2798_v8  ;;  %v1763_v28 = vld [vmem:[#allocation3 + $0xe0] sm:$0xff] }
 0x978   : > { %v2679_v29 = vpack.c.bf16 %v1764_v27, %v1763_v28 }
 0x97a   : > { %2680 = vmatpush1.bf16.msra.mxu1 %v2679_v29  ;;  %v1766_v30 = vld [vmem:[#allocation3 + $0x110] sm:$0xff] }
 0x97b   : > { %2681 = vmatprep.subr.bf16.mxu1 %v2798_v8  ;;  %v1765_v31 = vld [vmem:[#allocation3 + $0x100] sm:$0xff]  ;;  %v1859_v8 = vld [vmem:[%s3496_s15 + $0x60] sm:$0xff] }
 0x97c   : > { %v2682_v32 = vpack.c.bf16 %v1766_v30, %v1765_v31  ;;  %v2698_v40 = vpack.c.bf16 %v1861_v38, %v1859_v8  ;;  %v2241_v38 = vld [vmem:[%s3495_s14] sm:$0xf] }
 0x97e   : > { %2683 = vmatpush1.bf16.msra.mxu1 %v2682_v32  ;;  %2699 = vmatpush1.bf16.msra.mxu0 %v2698_v40 }
 0x981   : > { %1841 = vmatmul.mubr.f32.vlgmr.msra.gmra.mrb[4].mxu1 %v1747_v33 }
 0x984   : > { %v1771_v41 = vpop.permute.xlu1 %1770 }
 0xa54   : > { %v1842_v42 = vpop.f32.mrb[4].mxu1 }
 0xa55   : > { %v1843_v34 = vadd.f32 %v1842_v42, %v1771_v41  ;;  %v1844_v43 = vpop.f32.mrb[5].mxu1 }
 0xa57   : > { %v1846_v44 = vmax.f32 %v1843_v34, 0.0 }
 0xa59   : > { %2462 = vmatmul.mubr.msk.f32.vlgmr.msra.gmra.mrb[6].mxu0 %vm1161_vm10, %v1846_v44  ;;  %vm1950_vm10 = vcmask 1047688  }
 0xa5a   : > { %2314 = vmatprep.mubr.f32.mxu0 %v2776_v2  ;;  %v2038_v2 = vrot.slane %v2033_v49, %v2911_v4 }
 0xb2c   : > { %v1932_v39 = vpop.f32.mrb[6].mxu0 }
 0xb2d   : > { %1942 = vrot.lane.b32.xlu0 %v1932_v39, %s3573_s6  ;;  %v1934_v45 = vpop.f32.mrb[7].mxu0 }
 0xb2e   : > { %1944 = vrot.lane.b32.xlu1 %v1934_v45, %s3573_s6  ;;  %s3576_s6 = smov 95  }
 0xb31   : > { %2004 = vrot.lane.b32.xlu0 %v1999_v47, %s3568_s4 }
 0xb32   : > { %2006 = vrot.lane.b32.xlu1 %v2003_v48, %s3568_s4 }
 0xb35   : > { %2043 = vrot.lane.b32.xlu0 %v2038_v2, %s3557_s0 }
 0xb36   : > { %2045 = vrot.lane.b32.xlu1 %v2042_v50, %s3557_s0  ;;  %s3575_s0 = smov 34  }
 0xb39   : > { %2100 = vrot.lane.b32.xlu0 %v2095_v52, %s3556_s23 }
 0xb3a   : > { %2102 = vrot.lane.b32.xlu1 %v2099_v53, %s3556_s23 }
 0xb3d   : > { %2139 = vrot.lane.b32.xlu0 %v2134_v55, %s3574_s30 }
 0xb3e   : > { %2141 = vrot.lane.b32.xlu1 %v2138_v56, %s3574_s30 }
 0xb41   : > { %2196 = vrot.lane.b32.xlu0 %v2191_v58, %s3575_s0 }
 0xb42   : > { %2198 = vrot.lane.b32.xlu1 %v2195_v59, %s3575_s0 }
 0xb9f   : > { %v1943_v62 = vpop.permute.xlu0 %1942 }
 0xba0   : > { %1951 = vst.msk [vmem:[#allocation2] sm:$0xff] %vm1950_vm10, %v1943_v62  ;;  %v1945_v63 = vpop.permute.xlu1 %1944 }
 0xba1   : > { %v1946_v0 = vsel %vm600_vm3, %v1943_v62, %v1945_v63  ;;  %1953 = vst.msk [vmem:[#allocation2 + $0x10] sm:$0xff] %vm600_vm3, %v1945_v63  ;;  %vm3579_vm3 = vcmask 916480  }
 0xba2   : > { %1952 = vst [vmem:[#allocation2 + $0x8] sm:$0xff] %v1946_v0  ;;  %v3412_v1 = vmul.f32 %v1965_v61, %v1946_v0 }
 0xba3   : > { %v2005_v6 = vpop.permute.xlu0 %2004 }
 0xba4   : > { %1971 = vst [vmem:[#allocation3 + $0x8] sm:$0xff] %v3412_v1  ;;  %v2007_v4 = vpop.permute.xlu1 %2006 }
 0xba5   : > { %v2008_v18 = vsel %vm667_vm5, %v2005_v6, %v2007_v4  ;;  %vm3581_vm5 = vcmask 900096  }
 0xba6   : > { %v2013_v20 = vmul.f32 %v2008_v18, %v1946_v0 }
 0xba7   : > { %v1954_v7 = vld [vmem:[#allocation2] sm:$0xff]  ;;  %v2044_v10 = vpop.permute.xlu0 %2043 }
 0xba8   : > { %v3416_v9 = vmul.f32 %v1961_v3, %v1954_v7  ;;  %1978 = vrot.lane.b32.xlu0 %v1954_v7, %s3564_s19  ;;  %2075 = vrot.lane.b32.xlu1 %v1954_v7, %s3559_s1  ;;  %v1992_v5 = vld [vmem:[#allocation2 + $0x10] sm:$0xff]  ;;  %v2012_v11 = vmul.f32 %v2005_v6, %v1954_v7  ;;  %v2051_v13 = vmul.f32 %v2044_v10, %v1954_v7  ;;  %v2046_v14 = vpop.permute.xlu1 %2045 }
 0xba9   : > { %v2014_v21 = vmul.f32 %v2007_v4, %v1992_v5  ;;  %v2047_v22 = vsel %vm708_vm6, %v2044_v10, %v2046_v14  ;;  %v2053_v25 = vmul.f32 %v2046_v14, %v1992_v5  ;;  %vm3582_vm6 = vmmov %vm3581_vm5 }
 0xbaa   : > { %1970 = vst [vmem:[#allocation3] sm:$0xff] %v3416_v9  ;;  %v2052_v24 = vmul.f32 %v2047_v22, %v1946_v0 }
 0xbab   : > { %v2101_v12 = vpop.permute.xlu0 %2100 }
 0xbac   : > { %2079 = vrot.lane.b32.xlu0 %v1992_v5, %s3559_s1  ;;  %1982 = vrot.lane.b32.xlu1 %v1992_v5, %s3564_s19  ;;  %v2108_v16 = vmul.f32 %v2101_v12, %v1954_v7  ;;  %v2103_v19 = vpop.permute.xlu1 %2102 }
 0xbad   : > { %v2104_v23 = vsel %vm771_vm7, %v2101_v12, %v2103_v19  ;;  %v2110_v28 = vmul.f32 %v2103_v19, %v1992_v5  ;;  %vm3583_vm7 = vcmask 785408  }
 0xbae   : > { %v2109_v27 = vmul.f32 %v2104_v23, %v1946_v0 }
 0xbaf   : > { %v2140_v15 = vpop.permute.xlu0 %2139 }
 0xbb0   : > { %2175 = vrot.lane.b32.xlu0 %v1992_v5, %s3576_s6  ;;  %2018 = vrot.lane.b32.xlu1 %v2012_v11, %s3558_s2  ;;  %v2147_v17 = vmul.f32 %v2140_v15, %v1954_v7  ;;  %v2142_v26 = vpop.permute.xlu1 %2141 }
 0xbb1   : > { %v2143_v29 = vsel %vm815_vm4, %v2140_v15, %v2142_v26  ;;  %v2149_v33 = vmul.f32 %v2142_v26, %v1992_v5  ;;  %vm3580_vm4 = vmmov %vm3579_vm3 }
 0xbb2   : > { %v2148_v32 = vmul.f32 %v2143_v29, %v1946_v0 }
 0xbb3   : > { %v2197_v30 = vpop.permute.xlu0 %2196 }
 0xbb4   : > { %2077 = vrot.lane.b32.xlu1 %v1946_v0, %s3559_s1  ;;  %1980 = vrot.lane.b32.xlu0 %v1946_v0, %s3564_s19  ;;  %v2199_v31 = vpop.permute.xlu1 %2198  ;;  %v2204_v8 = vmul.f32 %v2197_v30, %v1954_v7 }
 0xbb5   : > { %v2200_v35 = vsel %vm878_vm8, %v2197_v30, %v2199_v31  ;;  %v2206_v37 = vmul.f32 %v2199_v31, %v1992_v5  ;;  %vm3584_vm8 = vmmov %vm3583_vm7 }
 0xbb6   : > { %v2205_v36 = vmul.f32 %v2200_v35, %v1946_v0 }
 0xbb8   : > { %2173 = vrot.lane.b32.xlu1 %v1946_v0, %s3576_s6  ;;  %2057 = vrot.lane.b32.xlu0 %v2051_v13, %s3572_s22 }
 0xbbc   : > { %2153 = vrot.lane.b32.xlu1 %v2147_v17, %s3577_s7  ;;  %2114 = vrot.lane.b32.xlu0 %v2108_v16, %s3562_s20 }
 0xbc0   : > { %2022 = vrot.lane.b32.xlu0 %v2014_v21, %s3558_s2  ;;  %2020 = vrot.lane.b32.xlu1 %v2013_v20, %s3558_s2  ;;  %s3578_s2 = smov 94  }
 0xbc4   : > { %2061 = vrot.lane.b32.xlu0 %v2053_v25, %s3572_s22  ;;  %2059 = vrot.lane.b32.xlu1 %v2052_v24, %s3572_s22  ;;  %v2222_v24 = vld [vmem:[%s3494_s13] sm:$0xf] }
 0xbc8   : > { %2118 = vrot.lane.b32.xlu0 %v2110_v28, %s3562_s20  ;;  %2116 = vrot.lane.b32.xlu1 %v2109_v27, %s3562_s20 }
 0xbcc   : > { %2157 = vrot.lane.b32.xlu0 %v2149_v33, %s3577_s7  ;;  %2155 = vrot.lane.b32.xlu1 %v2148_v32, %s3577_s7 }
 0xbd0   : > { %2171 = vrot.lane.b32.xlu0 %v1954_v7, %s3576_s6  ;;  %2212 = vrot.lane.b32.xlu1 %v2205_v36, %s3578_s2 }
 0xbd4   : > { %2214 = vrot.lane.b32.xlu0 %v2206_v37, %s3578_s2  ;;  %2210 = vrot.lane.b32.xlu1 %v2204_v8, %s3578_s2 }
 0xbd8   : > { %2244 = vperm.xlu0 %2747, %v2241_v38  }
 0xc1a   : > { %v1979_v40 = vpop.permute.xlu0 %1978  ;;  %v2076_v41 = vpop.permute.xlu1 %2075 }
 0xc1e   : > { %v2080_v42 = vpop.permute.xlu0 %2079  ;;  %v1983_v34 = vpop.permute.xlu1 %1982 }
 0xc22   : > { %v2176_v43 = vpop.permute.xlu0 %2175  ;;  %v2019_v44 = vpop.permute.xlu1 %2018 }
 0xc26   : > { %v1981_v46 = vpop.permute.xlu0 %1980  ;;  %v2078_v39 = vpop.permute.xlu1 %2077 }
 0xc27   : > { %v1984_v45 = vsel %vm642_vm11, %v1979_v40, %v1981_v46  ;;  %v1985_v47 = vsel %vm642_vm11, %v1981_v46, %v1983_v34  ;;  %v2081_v48 = vsel %vm747_vm9, %v2076_v41, %v2078_v39  ;;  %v2082_v49 = vsel %vm747_vm9, %v2078_v39, %v2080_v42 }
 0xc28   : > { %1988 = vst [vmem:[#allocation3 + $0x10] sm:$0xff] %v1984_v45  ;;  %1989 = vst [vmem:[#allocation3 + $0x18] sm:$0xff] %v1985_v47  ;;  %v2700_v2 = vpack.c.bf16 %v1985_v47, %v3412_v1  ;;  %v2702_v50 = vpack.c.bf16 %v1984_v45, %v3416_v9  ;;  %vm3585_vm9 = vcmask 769024  }
 0xc29   : > { %2085 = vst [vmem:[#allocation3 + $0x40] sm:$0xff] %v2081_v48  ;;  %2086 = vst [vmem:[#allocation3 + $0x48] sm:$0xff] %v2082_v49 }
 0xc2a   : > { %v2058_v51 = vpop.permute.xlu0 %2057  ;;  %v2174_v52 = vpop.permute.xlu1 %2173  ;;  %2701 = vmatprep.subr.bf16.mxu0 %v2700_v2  ;;  %vm3586_vm11 = vmmov %vm3585_vm9 }
 0xc2b   : > { %v2178_v53 = vsel %vm854_vm12, %v2174_v52, %v2176_v43  ;;  %2703 = vmatpush1.bf16.msra.mxu0 %v2702_v50 }
 0xc2e   : > { %v2115_v54 = vpop.permute.xlu0 %2114  ;;  %v2154_v55 = vpop.permute.xlu1 %2153 }
 0xc32   : > { %v2023_v56 = vpop.permute.xlu0 %2022  ;;  %v2021_v57 = vpop.permute.xlu1 %2020 }
 0xc33   : > { %v2024_v58 = vsel %vm684_vm13, %v2019_v44, %v2021_v57  ;;  %v2025_v59 = vsel %vm684_vm13, %v2021_v57, %v2023_v56 }
 0xc34   : > { %2028 = vst [vmem:[#allocation3 + $0x20] sm:$0xff] %v2024_v58  ;;  %2029 = vst [vmem:[#allocation3 + $0x28] sm:$0xff] %v2025_v59 }
 0xc36   : > { %v2062_v60 = vpop.permute.xlu0 %2061  ;;  %v2060_v61 = vpop.permute.xlu1 %2059 }
 0xc37   : > { %v2063_v62 = vsel %vm3579_vm3, %v2058_v51, %v2060_v61  ;;  %v2064_v63 = vsel %vm3580_vm4, %v2060_v61, %v2062_v60 }
 0xc38   : > { %2067 = vst [vmem:[#allocation3 + $0x30] sm:$0xff] %v2063_v62  ;;  %2068 = vst [vmem:[#allocation3 + $0x38] sm:$0xff] %v2064_v63  ;;  %v2704_v0 = vpack.c.bf16 %v2064_v63, %v2025_v59  ;;  %v2706_v1 = vpack.c.bf16 %v2063_v62, %v2024_v58 }
 0xc3a   : > { %v2119_v3 = vpop.permute.xlu0 %2118  ;;  %v2117_v6 = vpop.permute.xlu1 %2116  ;;  %2705 = vmatprep.subr.bf16.mxu0 %v2704_v0 }
 0xc3b   : > { %v2120_v7 = vsel %vm3581_vm5, %v2115_v54, %v2117_v6  ;;  %v2121_v9 = vsel %vm3582_vm6, %v2117_v6, %v2119_v3  ;;  %2707 = vmatpush1.bf16.msra.mxu0 %v2706_v1 }
 0xc3c   : > { %2124 = vst [vmem:[#allocation3 + $0x50] sm:$0xff] %v2120_v7  ;;  %v2708_v5 = vpack.c.bf16 %v2121_v9, %v2082_v49  ;;  %v2710_v10 = vpack.c.bf16 %v2120_v7, %v2081_v48 }
 0xc3e   : > { %v2158_v11 = vpop.permute.xlu0 %2157  ;;  %v2156_v4 = vpop.permute.xlu1 %2155  ;;  %2709 = vmatprep.subr.bf16.mxu0 %v2708_v5 }
 0xc3f   : > { %v2159_v12 = vsel %vm3583_vm7, %v2154_v55, %v2156_v4  ;;  %v2160_v13 = vsel %vm3584_vm8, %v2156_v4, %v2158_v11  ;;  %2711 = vmatpush1.bf16.msra.mxu0 %v2710_v10 }
 0xc40   : > { %2163 = vst [vmem:[#allocation3 + $0x60] sm:$0xff] %v2159_v12  ;;  %v2712_v14 = vpack.c.bf16 %v2178_v53, %v2160_v13 }
 0xc42   : > { %v2172_v15 = vpop.permute.xlu0 %2171  ;;  %v2213_v16 = vpop.permute.xlu1 %2212  ;;  %2713 = vmatprep.subr.bf16.mxu0 %v2712_v14 }
 0xc43   : > { %v2177_v17 = vsel %vm854_vm12, %v2172_v15, %v2174_v52 }
 0xc44   : > { %2181 = vst [vmem:[#allocation3 + $0x70] sm:$0xff] %v2177_v17  ;;  %v2714_v18 = vpack.c.bf16 %v2177_v17, %v2159_v12 }
 0xc46   : > { %v2215_v19 = vpop.permute.xlu0 %2214  ;;  %v2211_v20 = vpop.permute.xlu1 %2210  ;;  %2715 = vmatpush1.bf16.msra.mxu0 %v2714_v18 }
 0xc47   : > { %v2217_v21 = vsel %vm3585_vm9, %v2213_v16, %v2215_v19  ;;  %v2216_v22 = vsel %vm3586_vm11, %v2211_v20, %v2213_v16 }
 0xc48   : > { %2220 = vst [vmem:[#allocation3 + $0x80] sm:$0xff] %v2216_v22  ;;  %2266 = vmatprep.subr.mxu0 %v2217_v21 }
 0xc4a   : > { %2267 = vmatpush1.msra.mxu0 %v2216_v22 }
 0xc4b   : > { %2466 = vmatmul.mubr.msk.f32.vlgmr.msra.gmra.mrb[8].mxu0 %vm1284_vm15, %v2222_v24 }
 0xc57   : > { %v2245_v25 = vpop.permute.xlu0 %2244 }
 0xd1e   : > { %v2316_v26 = vpop.f32.mrb[8].mxu0 }
 0xd1f   : > { %v2317_v23 = vadd.f32 %v2316_v26, %v2245_v25  ;;  %v2318_v27 = vpop.f32.mrb[9].mxu0 }
 0xd20   : > { %v2319_v28 = vadd.f32 %v2318_v27, %v2245_v25 }
 0xd21   : > { %v2467_v29 = vmul.f32 -1.442695, %v2317_v23 }
 0xd22   : > { %v2468_v30 = vmul.f32 -1.442695, %v2319_v28 }
 0xd23   : > { %2760 = vpow2.f32 %v2467_v29 }
 0xd24   : > { %2762 = vpow2.f32 %v2468_v30 }
 0xd2d   : > { %v2761_v31 = vpop.eup %2760 }
 0xd2e   : > { %v2763_v32 = vpop.eup %2762  ;;  %v2327_v33 = vadd.f32 1.0, %v2761_v31 }
 0xd2f   : > { %v2328_v35 = vadd.f32 1.0, %v2763_v32 }
 0xd30   : > { %2764 = vrcp.f32 %v2327_v33 }
 0xd31   : > { %2766 = vrcp.f32 %v2328_v35 }
 0xd3a   : > { %v2765_v36 = vpop.eup %2764 }
 0xd3b   : > { %v2767_v8 = vpop.eup %2766 }
 0xd3c   : > { %v2335_v37 = vcombine.low %v2765_v36, %v2767_v8 }
 0xd3e   : > { %2337 = vst [vmem:[%s588_s25] sm:$0xff] %v2335_v37 }
 0xd3f PF: > { %s29_s27 = sadd.s32 1, %s2774_s27  }
 0xd40   : > { %p26_p4 = scmp.ge.s32.totalorder %s29_s27, 4  }
 0xd42   :  { %28 = sbr.rel (!%p26_p4) target bundleno = 9 (0x9), region = 132 }

</bundles_post_ra>
